<compile_context>
chip_gen: v5e
topology: v5e:2x2
jax: 0.10.0
libtpu: 0.0.40
codegen_flags: <defaults>
</compile_context>

<pallas_src>
import math

import jax
import jax.numpy as jnp
from jax.experimental import pallas as pl
from jax.experimental.pallas import tpu as pltpu


def _matmul_bn_gelu_kernel(p_ref, w_ref, scale_ref, bias_ref, o_ref):
    """One (TM, K) @ (K, TN) tile of the im2col'd conv, fused BN affine + exact GELU.

    p_ref:     (TM, K)  bf16 im2col patches, K = KH*KW*Cin
    w_ref:     (K, TN)  bf16 conv weights, Cout zero-padded to the 128-lane width
    scale_ref: (1, TN)  f32 folded-BN scale  (gamma / sqrt(var + eps))
    bias_ref:  (1, TN)  f32 folded-BN bias   (beta + (conv_b - mean) * scale)
    o_ref:     (TM, TN) f32 lane-dense output slab
    """
    acc = jnp.dot(p_ref[...], w_ref[...], preferred_element_type=jnp.float32)
    y = acc * scale_ref[...] + bias_ref[...]
    # Exact erf GELU (matches torch.nn.GELU default). A tanh-approx GELU would move
    # the transcendental onto the otherwise-idle EUP slot if exactness were relaxed.
    y = 0.5 * y * (1.0 + jax.lax.erf(y * (1.0 / math.sqrt(2.0))))
    o_ref[...] = y.astype(o_ref.dtype)


def _pick_row_tile(m):
    """Big (>=256-row) blocks, but keep >=2 grid steps when possible (v7x megacore)."""
    for t in (1024, 512, 256):
        if m % t == 0 and m // t >= 2:
            return t
    for t in (1024, 512, 256, 128, 64, 32, 16, 8):
        if m % t == 0:
            return t
    return m  # single full block (block_shape == full dim is always legal)


def conv_block_forward(x_nchw, conv_w, conv_b, gamma, beta,
                       running_mean, running_var, eps=1e-5,
                       compute_dtype=jnp.bfloat16):
    """Inference-mode ConvBlock forward. Input/output NCHW float32."""
    N, Cin, H, W = x_nchw.shape
    Cout, _, KH, KW = conv_w.shape
    pad = (KH - 1) // 2  # module default: kernel=3, padding=1

    # ---- wrapper-side layout plumbing (fused by XLA under jit) -------------------
    # NCHW -> NHWC, zero-pad spatial, im2col along the LAST (lane) dim so the kernel
    # sees one lane-packed (M, KH*KW*Cin) matmul operand (no shifted slices in-kernel).
    x = jnp.transpose(x_nchw, (0, 2, 3, 1)).astype(compute_dtype)          # (N,H,W,Cin)
    xp = jnp.pad(x, ((0, 0), (pad, pad), (pad, pad), (0, 0)))
    patches = jnp.concatenate(
        [xp[:, dy:dy + H, dx:dx + W, :] for dy in range(KH) for dx in range(KW)],
        axis=-1)                                                           # (N,H,W,KH*KW*Cin)
    K = KH * KW * Cin
    M = N * H * W
    patches = patches.reshape(M, K)

    # Conv weights OIHW -> rows ordered (dy, dx, cin) to match the patch concat order,
    # with Cout zero-padded up to a multiple of 128 for lane-dense output stores.
    TN = 128
    Cout_pad = ((Cout + TN - 1) // TN) * TN
    w = jnp.transpose(conv_w, (2, 3, 1, 0)).reshape(K, Cout)
    w = jnp.pad(w, ((0, 0), (0, Cout_pad - Cout))).astype(compute_dtype)   # (K, Cout_pad)

    # Fold BatchNorm (running stats) + conv bias into one per-channel f32 affine.
    inv_std = 1.0 / jnp.sqrt(running_var.astype(jnp.float32) + eps)
    scale = gamma.astype(jnp.float32) * inv_std
    bias = (beta.astype(jnp.float32)
            + (conv_b.astype(jnp.float32) - running_mean.astype(jnp.float32)) * scale)
    scale = jnp.pad(scale, (0, Cout_pad - Cout)).reshape(1, Cout_pad)
    bias = jnp.pad(bias, (0, Cout_pad - Cout)).reshape(1, Cout_pad)

    TM = _pick_row_tile(M)
    grid = (M // TM, Cout_pad // TN)

    out = pl.pallas_call(
        _matmul_bn_gelu_kernel,
        out_shape=jax.ShapeDtypeStruct((M, Cout_pad), jnp.float32),
        grid=grid,
        in_specs=[
            pl.BlockSpec((TM, K), lambda i, j: (i, 0)),   # patches row band
            pl.BlockSpec((K, TN), lambda i, j: (0, j)),   # weight column band
            pl.BlockSpec((1, TN), lambda i, j: (0, j)),   # folded BN scale
            pl.BlockSpec((1, TN), lambda i, j: (0, j)),   # folded BN bias
        ],
        out_specs=pl.BlockSpec((TM, TN), lambda i, j: (i, j)),
        compiler_params=pltpu.CompilerParams(
            dimension_semantics=("parallel", "parallel")),
    )(patches, w, scale, bias)

    # Dropout2d(0.2): identity in eval mode.
    out = out[:, :Cout].reshape(N, H, W, Cout)
    return jnp.transpose(out, (0, 3, 1, 2))  # back to NCHW


def _reference_forward(x_nchw, conv_w, conv_b, gamma, beta, mean, var, eps=1e-5,
                       compute_dtype=jnp.bfloat16):
    """Pure-JAX reference with the same bf16-in / f32-accumulate numerics."""
    y = jax.lax.conv_general_dilated(
        x_nchw.astype(compute_dtype), conv_w.astype(compute_dtype),
        window_strides=(1, 1), padding=((1, 1), (1, 1)),
        dimension_numbers=("NCHW", "OIHW", "NCHW"),
        preferred_element_type=jnp.float32)
    y = y + conv_b.reshape(1, -1, 1, 1)
    inv_std = 1.0 / jnp.sqrt(var.astype(jnp.float32) + eps)
    y = (y - mean.reshape(1, -1, 1, 1)) * (gamma * inv_std).reshape(1, -1, 1, 1) \
        + beta.reshape(1, -1, 1, 1)
    return 0.5 * y * (1.0 + jax.lax.erf(y * (1.0 / math.sqrt(2.0))))


if __name__ == "__main__":
    # Small shapes consistent with the module: N=2, Cin=4, Cout=8, 16x16 spatial.
    N, Cin, Cout, H, W, KS = 2, 4, 8, 16, 16, 3

    key = jax.random.PRNGKey(0)
    k_x, k_w, k_b, k_g, k_be, k_m, k_v = jax.random.split(key, 7)

    x = jax.random.normal(k_x, (N, Cin, H, W), dtype=jnp.float32)

    # Deterministic PyTorch-shaped parameter init (synthetic, not a checkpoint).
    fan_in = Cin * KS * KS
    bound = 1.0 / math.sqrt(fan_in)
    conv_w = jax.random.uniform(k_w, (Cout, Cin, KS, KS),
                                minval=-bound, maxval=bound, dtype=jnp.float32)
    conv_b = jax.random.uniform(k_b, (Cout,),
                                minval=-bound, maxval=bound, dtype=jnp.float32)
    gamma = 1.0 + 0.1 * jax.random.normal(k_g, (Cout,), dtype=jnp.float32)
    beta = 0.1 * jax.random.normal(k_be, (Cout,), dtype=jnp.float32)
    running_mean = 0.1 * jax.random.normal(k_m, (Cout,), dtype=jnp.float32)
    running_var = 1.0 + 0.1 * jax.random.uniform(k_v, (Cout,), dtype=jnp.float32)

    fwd = jax.jit(conv_block_forward)
    y = fwd(x, conv_w, conv_b, gamma, beta, running_mean, running_var)
    y = jax.block_until_ready(y)

    assert y.shape == (N, Cout, H, W), y.shape
    assert bool(jnp.all(jnp.isfinite(y)))

    y_ref = _reference_forward(x, conv_w, conv_b, gamma, beta,
                               running_mean, running_var)
    max_err = float(jnp.max(jnp.abs(y - y_ref)))
    assert max_err < 1e-2, f"max abs err vs reference: {max_err}"

    print("KERNEL_OK")
</pallas_src>

<mosaic_0001>
module attributes {stable_mosaic.version = 11 : i64} {
  func.func @_matmul_bn_gelu_kernel(%arg0: i32, %arg1: i32, %arg2: memref<256x36xbf16, #tpu.memory_space<vmem>>, %arg3: memref<36x128xbf16, #tpu.memory_space<vmem>>, %arg4: memref<1x128xf32, #tpu.memory_space<vmem>>, %arg5: memref<1x128xf32, #tpu.memory_space<vmem>>, %arg6: memref<256x128xf32, #tpu.memory_space<vmem>>) attributes {dimension_semantics = [#tpu.dimension_semantics<parallel>, #tpu.dimension_semantics<parallel>], iteration_bounds = array<i64: 2, 1>, scalar_prefetch = 0 : i64, scratch_operands = 0 : i64, tpu.core_type = #tpu.core_type<tc>, window_params = [{transform_indices = @transform_0, window_bounds = array<i64: 256, 36>}, {transform_indices = @transform_1, window_bounds = array<i64: 36, 128>}, {transform_indices = @transform_2, window_bounds = array<i64: 1, 128>}, {transform_indices = @transform_3, window_bounds = array<i64: 1, 128>}, {transform_indices = @transform_4, window_bounds = array<i64: 256, 128>}]} {
    %c0 = arith.constant 0 : index
    %c0_0 = arith.constant 0 : index
    %0 = vector.load %arg2[%c0, %c0_0] : memref<256x36xbf16, #tpu.memory_space<vmem>>, vector<256x36xbf16>
    %c0_1 = arith.constant 0 : index
    %c0_2 = arith.constant 0 : index
    %1 = vector.load %arg3[%c0_1, %c0_2] : memref<36x128xbf16, #tpu.memory_space<vmem>>, vector<36x128xbf16>
    %cst = arith.constant dense<0.000000e+00> : vector<256x128xf32>
    %2 = tpu.matmul %0, %1, %cst {dimension_numbers = #tpu.dot_dimension_numbers<[1], [0], [0], [1], [0, 0, 1, 1], [], []>} : vector<256x36xbf16>, vector<36x128xbf16>, vector<256x128xf32> -> vector<256x128xf32>
    %c0_3 = arith.constant 0 : index
    %c0_4 = arith.constant 0 : index
    %3 = vector.load %arg4[%c0_3, %c0_4] : memref<1x128xf32, #tpu.memory_space<vmem>>, vector<1x128xf32>
    %4 = vector.broadcast %3 : vector<1x128xf32> to vector<256x128xf32>
    %5 = arith.mulf %2, %4 : vector<256x128xf32>
    %c0_5 = arith.constant 0 : index
    %c0_6 = arith.constant 0 : index
    %6 = vector.load %arg5[%c0_5, %c0_6] : memref<1x128xf32, #tpu.memory_space<vmem>>, vector<1x128xf32>
    %7 = vector.broadcast %6 : vector<1x128xf32> to vector<256x128xf32>
    %8 = arith.addf %5, %7 : vector<256x128xf32>
    %cst_7 = arith.constant 5.000000e-01 : f32
    %9 = vector.broadcast %cst_7 : f32 to vector<256x128xf32>
    %10 = arith.mulf %9, %8 : vector<256x128xf32>
    %cst_8 = arith.constant 0.707106769 : f32
    %11 = vector.broadcast %cst_8 : f32 to vector<256x128xf32>
    %12 = arith.mulf %8, %11 : vector<256x128xf32>
    %13 = math.erf %12 : vector<256x128xf32>
    %cst_9 = arith.constant 1.000000e+00 : f32
    %14 = vector.broadcast %cst_9 : f32 to vector<256x128xf32>
    %15 = arith.addf %14, %13 : vector<256x128xf32>
    %16 = arith.mulf %10, %15 : vector<256x128xf32>
    %c0_10 = arith.constant 0 : index
    %c0_11 = arith.constant 0 : index
    %17 = vector.load %arg6[%c0_10, %c0_11] : memref<256x128xf32, #tpu.memory_space<vmem>>, vector<256x128xf32>
    tpu.vector_store %arg6[%c0_10, %c0_11], %16 {strides = array<i32>} : memref<256x128xf32, #tpu.memory_space<vmem>>, vector<256x128xf32>,
    return
  }
  func.func @transform_0(%arg0: i32, %arg1: i32) -> (i32, i32) {
    %c0_i32 = arith.constant 0 : i32
    %c0_i32_0 = arith.constant 0 : i32
    return %arg0, %c0_i32 : i32, i32
  }
  func.func @transform_1(%arg0: i32, %arg1: i32) -> (i32, i32) {
    %c0_i32 = arith.constant 0 : i32
    %c0_i32_0 = arith.constant 0 : i32
    return %c0_i32, %arg1 : i32, i32
  }
  func.func @transform_2(%arg0: i32, %arg1: i32) -> (i32, i32) {
    %c0_i32 = arith.constant 0 : i32
    %c0_i32_0 = arith.constant 0 : i32
    return %c0_i32, %arg1 : i32, i32
  }
  func.func @transform_3(%arg0: i32, %arg1: i32) -> (i32, i32) {
    %c0_i32 = arith.constant 0 : i32
    %c0_i32_0 = arith.constant 0 : i32
    return %c0_i32, %arg1 : i32, i32
  }
  func.func @transform_4(%arg0: i32, %arg1: i32) -> (i32, i32) {
    %c0_i32 = arith.constant 0 : i32
    return %arg0, %arg1 : i32, i32
  }
}

</mosaic_0001>

<bundles_post_ra>
// kernel: conv_block_forward.1
= control target key start
LH: loop header
LB: loop body
LE: loop exit
PB: predicated region body
PF: predicated region fallthrough
CT: control target
= control target key end

     0   :  { %s2471_s15 = smov 0   ;;  %s2473_s16 = smov 0   ;;  %s3761_s0 = inlined_call_operand.vmem [shape: bf16[512,36], index: 0, kind: input, shape index: {}]   ;;  %s3762_s1 = inlined_call_operand.vmem [shape: bf16[36,128], index: 1, kind: input, shape index: {}]   ;;  %s3763_s2 = inlined_call_operand.vmem [shape: f32[1,128], index: 2, kind: input, shape index: {}]   ;;  %s3764_s3 = inlined_call_operand.vmem [shape: f32[1,128], index: 3, kind: input, shape index: {}]   ;;  %s3765_s4 = inlined_call_operand.vmem [shape: f32[512,128], index: 4, kind: output, shape index: {}]  }
   0x1   :  { %s2475_s17 = smov 0  }
   0x2 LB: > { %s26_s18 = sadd.s32 1, %s2440_s16  ;;  %p2174_p0 = scmp.ge.s32.totalorder %s2444_s17, 1  ;;  %s2444_s17 = sphi %s2475_s17, %s14_s17   ;;  %s2440_s16 = sphi %s2473_s16, %s3797_s16   ;;  %s2436_s15 = sphi %s2471_s15, %s3796_s15  }
   0x3   : > { %p28_p1 = scmp.ge.s32.totalorder %s26_s18, 2  ;;  %p202_p2 = scmp.lt.s32.totalorder %s2444_s17, 3 }
   0x5   : > { %s3799_s18 = smov (%p28_p1, %s26_s18), 0  ;;  %p203_p3 = pnand %p2174_p0, %p202_p2 }
   0x6   : > { %s2175_s21 = sshll.u32 (!%p203_p3), %s2436_s15, 5 }
   0x7   : > { %206 = sbr.rel (%p203_p3) target bundleno = 534 (0x216), region = 36  ;;  %p242_p4 = scmp.lt.s32.totalorder (!%p203_p3), %s2175_s21, 63 }
   0xc   : > { %v303_v0 = vld [vmem:[%s3762_s1 + $0x10] sm:$0x3]  ;;  %vm448_vm0 = vcmask 1041408   ;;  %s3801_s21 = smov (!%p242_p4, %s2175_s21), 63  ;;  %v2318_v4 = vld [vmem:[%s3762_s1 + $0x8] sm:$0xff]  ;;  %v2317_v5 = vld [vmem:[%s3762_s1] sm:$0xff] }
   0xd   : > { %v393_v1 = vunpack.c.l.b16 %v303_v0  ;;  %s2176_s24 = sshll.u32 %s3801_s21, 2  ;;  %vm399_vm1 = vcmask 293888   ;;  %v2541_v22 = vld [vmem:[%s3763_s2] ss:$0 sm:$0xff]  ;;  %s2178_s8 = sshll.u32 %s3801_s21, 3 }
   0xe   : > { %s2504_s29 = scalar_lea.vmem %s3761_s0, %s2176_s24  ;;  %v2546_v23 = vld [vmem:[%s3764_s3] ss:$0 sm:$0xff]  ;;  %s2733_s11 = scalar_lea.vmem %s3765_s4, %s2178_s8 }
   0xf   : > { %v396_v2 = vpack.c.b16 %v393_v1, %v393_v1  ;;  %v2301_v6 = vld [vmem:[%s2504_s29] sm:$0xff]  ;;  %v2302_v10 = vld [vmem:[%s2504_s29 + $0x8] sm:$0xff]  ;;  %v2303_v14 = vld [vmem:[%s2504_s29 + $0x10] sm:$0xff] }
  0x10   : > { %v2305_v7 = vld [vmem:[%s2504_s29 + $0x20] sm:$0xff]  ;;  %v2306_v11 = vld [vmem:[%s2504_s29 + $0x28] sm:$0xff]  ;;  %v2307_v15 = vld [vmem:[%s2504_s29 + $0x30] sm:$0xff] }
  0x11   : > { %v450_v3 = vsel %vm448_vm0, %v396_v2, 0  ;;  %v2309_v8 = vld [vmem:[%s2504_s29 + $0x40] sm:$0xff]  ;;  %v2310_v12 = vld [vmem:[%s2504_s29 + $0x48] sm:$0xff]  ;;  %v2311_v16 = vld [vmem:[%s2504_s29 + $0x50] sm:$0xff] }
  0x12   : > { %457 = vmatpush.bf16.msra.mxu0 %v450_v3  ;;  %2319 = vmatpush.bf16.msra.mxu1 %v450_v3  ;;  %v2313_v9 = vld [vmem:[%s2504_s29 + $0x60] sm:$0xff]  ;;  %v2314_v13 = vld [vmem:[%s2504_s29 + $0x68] sm:$0xff]  ;;  %v2315_v17 = vld [vmem:[%s2504_s29 + $0x70] sm:$0xff] }
  0x13   : > { %2320 = vmatpush.bf16.msra.mxu2 %v450_v3  ;;  %2321 = vmatpush.bf16.msra.mxu3 %v450_v3  ;;  %v2304_v18 = vld [vmem:[%s2504_s29 + $0x18] sm:$0xff] }
  0x14   : > { %v2308_v19 = vld [vmem:[%s2504_s29 + $0x38] sm:$0xff] }
  0x15   : > { %v2312_v20 = vld [vmem:[%s2504_s29 + $0x58] sm:$0xff] }
  0x16   : > { %458 = vmatpush.bf16.msra.mxu0 %v2318_v4  ;;  %2322 = vmatpush.bf16.msra.mxu1 %v2318_v4  ;;  %v2316_v21 = vld [vmem:[%s2504_s29 + $0x78] sm:$0xff] }
  0x17   : > { %2323 = vmatpush.bf16.msra.mxu2 %v2318_v4  ;;  %2324 = vmatpush.bf16.msra.mxu3 %v2318_v4 }
  0x1a   : > { %459 = vmatpush.bf16.msra.mxu0 %v2317_v5  ;;  %2325 = vmatpush.bf16.msra.mxu1 %v2317_v5 }
  0x1b   : > { %2326 = vmatpush.bf16.msra.mxu2 %v2317_v5  ;;  %2327 = vmatpush.bf16.msra.mxu3 %v2317_v5 }
  0x1d   : > { %2251 = vmatmul.msk.bf16.vlgmr.msra.gmra.mxu0 %vm399_vm1, %v2301_v6  ;;  %2255 = vmatmul.msk.bf16.vlgmr.msra.gmra.mxu1 %vm399_vm1, %v2305_v7 }
  0x1e   : > { %2259 = vmatmul.msk.bf16.vlgmr.msra.gmra.mxu2 %vm399_vm1, %v2309_v8  ;;  %2263 = vmatmul.msk.bf16.vlgmr.msra.gmra.mxu3 %vm399_vm1, %v2313_v9 }
  0x2d   : > { %2252 = vmatmul.msk.bf16.gmra.mxu0 %vm399_vm1, %v2302_v10  ;;  %2256 = vmatmul.msk.bf16.gmra.mxu1 %vm399_vm1, %v2306_v11 }
  0x2e   : > { %2260 = vmatmul.msk.bf16.gmra.mxu2 %vm399_vm1, %v2310_v12  ;;  %2264 = vmatmul.msk.bf16.gmra.mxu3 %vm399_vm1, %v2314_v13 }
  0x3d   : > { %2253 = vmatmul.msk.bf16.gmra.mxu0 %vm399_vm1, %v2303_v14  ;;  %2257 = vmatmul.msk.bf16.gmra.mxu1 %vm399_vm1, %v2307_v15 }
  0x3e   : > { %2261 = vmatmul.msk.bf16.gmra.mxu2 %vm399_vm1, %v2311_v16  ;;  %2265 = vmatmul.msk.bf16.gmra.mxu3 %vm399_vm1, %v2315_v17 }
  0x4d   : > { %2254 = vmatmul.msk.bf16.gmra.mxu0 %vm399_vm1, %v2304_v18  ;;  %2258 = vmatmul.msk.bf16.gmra.mxu1 %vm399_vm1, %v2308_v19 }
  0x4e   : > { %2262 = vmatmul.msk.bf16.gmra.mxu2 %vm399_vm1, %v2312_v20  ;;  %2266 = vmatmul.msk.bf16.gmra.mxu3 %vm399_vm1, %v2316_v21 }
  0x9a   : > { %v461_v24 = vpop.f32.mrf.mxu0  ;;  %v481_v25 = vpop.f32.mrf.mxu1 }
  0x9b   : > { %v545_v26 = vmul.f32 %v2541_v22, %v461_v24  ;;  %v553_v27 = vmul.f32 %v2541_v22, %v481_v25 }
  0x9d   : > { %v581_v28 = vadd.f32 %v2546_v23, %v545_v26  ;;  %v2552_v29 = vadd.f32 %v2546_v23, %v553_v27 }
  0x9f   : > { %v2554_v30 = vmul.f32 0.70710677, %v581_v28  ;;  %v2557_v31 = vmul.f32 0.70710677, %v2552_v29  ;;  %v2588_v55 = vmul.f32 0.5, %v581_v28 }
  0xa1   : > { %v677_v32 = vmul.f32 %v2554_v30, %v2554_v30  ;;  %v997_v33 = vmul.f32 %v2557_v31, %v2557_v31  ;;  %v501_v34 = vpop.f32.mrf.mxu2  ;;  %v521_v35 = vpop.f32.mrf.mxu3 }
  0xa2   : > { %v561_v36 = vmul.f32 %v2541_v22, %v501_v34  ;;  %v569_v37 = vmul.f32 %v2541_v22, %v521_v35  ;;  %v463_v40 = vpop.f32.mrf.mxu0 }
  0xa3   : > { %v2565_v38 = vmin.f32 %v677_v32, 16.0  ;;  %v2567_v39 = vmin.f32 %v997_v33, 16.0  ;;  %v546_v48 = vmul.f32 %v2541_v22, %v463_v40 }
  0xa4   : > { %v2570_v41 = vadd.f32 %v2546_v23, %v561_v36  ;;  %v2573_v42 = vadd.f32 %v2546_v23, %v569_v37 }
  0xa5   : > { %v679_v43 = vmul.f32 2.1237322e-06, %v2565_v38  ;;  %v690_v44 = vmul.f32 3.8918573e-05, %v2565_v38  ;;  %v999_v45 = vmul.f32 2.1237322e-06, %v2567_v39  ;;  %v2599_v62 = vadd.f32 %v2546_v23, %v546_v48 }
  0xa6   : > { %v1010_v46 = vmul.f32 3.8918573e-05, %v2567_v39  ;;  %v2580_v47 = vmul.f32 0.70710677, %v2570_v41  ;;  %v2586_v54 = vmul.f32 0.70710677, %v2573_v42 }
  0xa7   : > { %v680_v49 = vadd.f32 0.00028619796, %v679_v43  ;;  %v691_v50 = vadd.f32 0.001143296, %v690_v44  ;;  %v1000_v51 = vadd.f32 0.00028619796, %v999_v45  ;;  %v483_v44 = vpop.f32.mrf.mxu1 }
  0xa8   : > { %v1011_v52 = vadd.f32 0.001143296, %v1010_v46  ;;  %v1317_v53 = vmul.f32 %v2580_v47, %v2580_v47  ;;  %v1637_v61 = vmul.f32 %v2586_v54, %v2586_v54  ;;  %v2610_v12 = vmul.f32 0.70710677, %v2599_v62 }
  0xa9   : > { %v681_v56 = vmul.f32 %v680_v49, %v2565_v38  ;;  %v692_v57 = vmul.f32 %v691_v50, %v2565_v38  ;;  %v1001_v58 = vmul.f32 %v1000_v51, %v2567_v39  ;;  %v503_v45 = vpop.f32.mrf.mxu2 }
  0xaa   : > { %v1012_v59 = vmul.f32 %v1011_v52, %v2567_v39  ;;  %v2594_v60 = vmin.f32 %v1317_v53, 16.0  ;;  %v2606_v8 = vmin.f32 %v1637_v61, 16.0  ;;  %v562_v61 = vmul.f32 %v2541_v22, %v503_v45 }
  0xab   : > { %v682_v63 = vadd.f32 0.0036580483, %v681_v56  ;;  %v693_v0 = vadd.f32 0.014752088, %v692_v57  ;;  %v1002_v1 = vadd.f32 0.0036580483, %v1001_v58  ;;  %v717_v58 = vmul.f32 %v2610_v12, %v2610_v12 }
  0xac   : > { %v1013_v2 = vadd.f32 0.014752088, %v1012_v59  ;;  %v1319_v3 = vmul.f32 2.1237322e-06, %v2594_v60  ;;  %v1330_v4 = vmul.f32 3.8918573e-05, %v2594_v60  ;;  %v554_v59 = vmul.f32 %v2541_v22, %v483_v44 }
  0xad   : > { %v683_v5 = vmul.f32 %v682_v63, %v2565_v38  ;;  %v694_v6 = vmul.f32 %v693_v0, %v2565_v38  ;;  %v1003_v7 = vmul.f32 %v1002_v1, %v2567_v39  ;;  %v1639_v19 = vmul.f32 2.1237322e-06, %v2606_v8 }
  0xae   : > { %v1014_v9 = vmul.f32 %v1013_v2, %v2567_v39  ;;  %v1320_v10 = vadd.f32 0.00028619796, %v1319_v3  ;;  %v1331_v11 = vadd.f32 0.001143296, %v1330_v4  ;;  %v1650_v25 = vmul.f32 3.8918573e-05, %v2606_v8 }
  0xaf   : > { %v684_v13 = vadd.f32 0.05243302, %v683_v5  ;;  %v695_v14 = vadd.f32 0.112945676, %v694_v6  ;;  %v1004_v15 = vadd.f32 0.05243302, %v1003_v7 }
  0xb0   : > { %v1015_v16 = vadd.f32 0.112945676, %v1014_v9  ;;  %v1321_v17 = vmul.f32 %v1320_v10, %v2594_v60  ;;  %v1332_v18 = vmul.f32 %v1331_v11, %v2594_v60  ;;  %v1640_v32 = vadd.f32 0.00028619796, %v1639_v19 }
  0xb1   : > { %v685_v20 = vmul.f32 %v684_v13, %v2565_v38  ;;  %v696_v21 = vmul.f32 %v695_v14, %v2565_v38  ;;  %v1005_v24 = vmul.f32 %v1004_v15, %v2567_v39  ;;  %v1651_v50 = vadd.f32 0.001143296, %v1650_v25 }
  0xb2   : > { %v1016_v26 = vmul.f32 %v1015_v16, %v2567_v39  ;;  %v1322_v27 = vadd.f32 0.0036580483, %v1321_v17  ;;  %v1333_v28 = vadd.f32 0.014752088, %v1332_v18  ;;  %v1641_v43 = vmul.f32 %v1640_v32, %v2606_v8 }
  0xb3   : > { %v686_v33 = vadd.f32 0.18741608, %v685_v20  ;;  %v697_v34 = vadd.f32 0.4994258, %v696_v21  ;;  %v1006_v35 = vadd.f32 0.18741608, %v1005_v24  ;;  %v1652_v3 = vmul.f32 %v1651_v50, %v2606_v8 }
  0xb4   : > { %v1017_v36 = vadd.f32 0.4994258, %v1016_v26  ;;  %v1323_v37 = vmul.f32 %v1322_v27, %v2594_v60  ;;  %v1334_v40 = vmul.f32 %v1333_v28, %v2594_v60  ;;  %v1642_v56 = vadd.f32 0.0036580483, %v1641_v43 }
  0xb5   : > { %v687_v46 = vmul.f32 %v686_v33, %v2565_v38  ;;  %v698_v48 = vmul.f32 %v697_v34, %v2565_v38  ;;  %v1007_v49 = vmul.f32 %v1006_v35, %v2567_v39  ;;  %v2640_v2 = vmul.f32 0.5, %v2552_v29 }
  0xb6   : > { %v1018_v51 = vmul.f32 %v1017_v36, %v2567_v39  ;;  %v1324_v52 = vadd.f32 0.05243302, %v1323_v37  ;;  %v1335_v53 = vadd.f32 0.112945676, %v1334_v40  ;;  %v1643_v39 = vmul.f32 %v1642_v56, %v2606_v8 }
  0xb7   : > { %v2627_v57 = vadd.f32 1.0, %v698_v48  ;;  %v688_v1 = vadd.f32 1.1283791, %v687_v46  ;;  %v1008_v4 = vadd.f32 1.1283791, %v1007_v49  ;;  %v2645_v5 = vmul.f32 0.5, %v2570_v41 }
  0xb8   : > { %v2633_v63 = vadd.f32 1.0, %v1018_v51  ;;  %v1325_v38 = vmul.f32 %v1324_v52, %v2594_v60  ;;  %v1336_v0 = vmul.f32 %v1335_v53, %v2594_v60  ;;  %v2648_v6 = vmul.f32 0.5, %v2573_v42 }
  0xb9   : > { %2354 = vrcp.f32 %v2627_v57  ;;  %v711_v7 = vand.u32 2147483648, %v2627_v57  ;;  %v2651_v10 = vmin.f32 %v717_v58, 16.0  ;;  %v2654_v11 = vadd.f32 %v2546_v23, %v554_v59 }
  0xba   : > { %2356 = vrcp.f32 %v2633_v63  ;;  %v1326_v9 = vadd.f32 0.18741608, %v1325_v38  ;;  %v709_v29 = vand.u32 2147483647, %v2627_v57  ;;  %v1337_v13 = vadd.f32 0.4994258, %v1336_v0 }
  0xbb   : > { %v1644_v14 = vadd.f32 0.05243302, %v1643_v39  ;;  %v2658_v15 = vadd.f32 %v2546_v23, %v562_v61  ;;  %v689_v41 = vmul.f32 %v688_v1, %v2554_v30  ;;  %v1029_v42 = vand.u32 2147483647, %v2633_v63 }
  0xbc   : > { %v1327_v16 = vmul.f32 %v1326_v9, %v2594_v60  ;;  %v1653_v17 = vadd.f32 0.014752088, %v1652_v3  ;;  %vm705_vm2 = vweird.f32 %v2627_v57  ;;  %v1009_v18 = vmul.f32 %v1008_v4, %v2557_v31 }
  0xbd   : > { %v1031_v19 = vand.u32 2147483648, %v2633_v63  ;;  %v1338_v20 = vmul.f32 %v1337_v13, %v2594_v60  ;;  %v712_v24 = vor.u32 1.1754944e-38, %v711_v7  ;;  %vm1025_vm3 = vweird.f32 %v2633_v63 }
  0xbe   : > { %v1645_v25 = vmul.f32 %v1644_v14, %v2606_v8  ;;  %v1654_v30 = vmul.f32 %v1653_v17, %v2606_v8  ;;  %vm2671_vm4 = vcmp.eq.f32.partialorder %v709_v29, 8.507059e+37  ;;  %v719_v32 = vmul.f32 2.1237322e-06, %v2651_v10 }
  0xbf   : > { %v2355_v21 = vpop.eup %2354  ;;  %v2675_v31 = vadd.f32 1.0, %v1338_v20  ;;  %v730_v60 = vmul.f32 3.8918573e-05, %v2651_v10  ;;  %vm2680_vm5 = vcmp.eq.f32.partialorder %v1029_v42, 8.507059e+37  ;;  %v1328_v35 = vadd.f32 1.1283791, %v1327_v16 }
  0xc0   : > { %v2357_v26 = vpop.eup %2356  ;;  %v701_v27 = vmul.f32 %v2355_v21, %v2627_v57  ;;  %v1655_v36 = vadd.f32 0.112945676, %v1654_v30  ;;  %v1032_v40 = vor.u32 1.1754944e-38, %v1031_v19  ;;  %v2686_v43 = vmul.f32 0.70710677, %v2654_v11 }
  0xc1   : > { %v1021_v33 = vmul.f32 %v2357_v26, %v2633_v63  ;;  %2358 = vrcp.f32 %v2675_v31  ;;  %vm706_vm6 = vweird.f32 %v2355_v21  ;;  %v2690_v46 = vmul.f32 0.70710677, %v2658_v15 }
  0xc2   : > { %v702_v37 = vsub.f32 1.0, %v701_v27  ;;  %v1656_v45 = vmul.f32 %v1655_v36, %v2606_v8  ;;  %v1646_v49 = vadd.f32 0.18741608, %v1645_v25  ;;  %v720_v50 = vadd.f32 0.00028619796, %v719_v32  ;;  %vm707_vm8 = vmor %vm705_vm2, %vm706_vm6 }
  0xc3   : > { %v1022_v44 = vsub.f32 1.0, %v1021_v33  ;;  %v731_v51 = vadd.f32 0.001143296, %v730_v60  ;;  %vm1026_vm7 = vweird.f32 %v2357_v26  ;;  %v2693_v53 = vmul.f32 %v1328_v35, %v2580_v47 }
  0xc4   : > { %v703_v48 = vmul.f32 %v2355_v21, %v702_v37  ;;  %v1657_v56 = vadd.f32 0.4994258, %v1656_v45  ;;  %v721_v59 = vmul.f32 %v720_v50, %v2651_v10  ;;  %v1037_v38 = vmul.f32 %v2686_v43, %v2686_v43  ;;  %vm1027_vm10 = vmor %vm1025_vm3, %vm1026_vm7 }
  0xc5   : > { %v1023_v52 = vmul.f32 %v2357_v26, %v1022_v44  ;;  %v732_v61 = vmul.f32 %v731_v51, %v2651_v10  ;;  %vm1345_vm9 = vweird.f32 %v2675_v31  ;;  %v1349_v39 = vand.u32 2147483647, %v2675_v31 }
  0xc6   : > { %v704_v58 = vadd.f32 %v2355_v21, %v703_v48  ;;  %v1351_v47 = vand.u32 2147483648, %v2675_v31  ;;  %v1658_v1 = vmul.f32 %v1657_v56, %v2606_v8  ;;  %v722_v7 = vadd.f32 0.0036580483, %v721_v59 }
  0xc7   : > { %v1024_v0 = vadd.f32 %v2357_v26, %v1023_v52  ;;  %v2359_v3 = vpop.eup %2358  ;;  %v733_v9 = vadd.f32 0.014752088, %v732_v61  ;;  %v2709_v57 = vmin.f32 %v1037_v38, 16.0  ;;  %v1647_v42 = vmul.f32 %v1646_v49, %v2606_v8 }
  0xc8   : > { %v708_v4 = vsel %vm707_vm8, %v2355_v21, %v704_v58  ;;  %v1341_v14 = vmul.f32 %v2359_v3, %v2675_v31  ;;  %v2717_v19 = vadd.f32 1.0, %v1658_v1  ;;  %v723_v63 = vmul.f32 %v722_v7, %v2651_v10 }
  0xc9   : > { %v713_v29 = vsel %vm2671_vm4, %v712_v24, %v708_v4  ;;  %v1028_v13 = vsel %vm1027_vm10, %v2357_v26, %v1024_v0  ;;  %v734_v25 = vmul.f32 %v733_v9, %v2651_v10  ;;  %v1039_v30 = vmul.f32 2.1237322e-06, %v2709_v57  ;;  %v523_v4 = vpop.f32.mrf.mxu3 }
  0xca   : > { %v714_v16 = vmul.f32 %v713_v29, %v689_v41  ;;  %v1033_v17 = vsel %vm2680_vm5, %v1032_v40, %v1028_v13  ;;  %v1342_v21 = vsub.f32 1.0, %v1341_v14  ;;  %vm2723_vm11 = vcmp.eq.f32.partialorder %v1349_v39, 8.507059e+37 }
  0xcb   : > { %v1034_v20 = vmul.f32 %v1033_v17, %v1009_v18  ;;  %2360 = vrcp.f32 %v2717_v19  ;;  %v1357_v8 = vmul.f32 %v2690_v46, %v2690_v46  ;;  %vm1346_vm12 = vweird.f32 %v2359_v3 }
  0xcc   : > { %v2267_v24 = vclamps-f32 %v714_v16, 1.0  ;;  %v1343_v27 = vmul.f32 %v2359_v3, %v1342_v21  ;;  %v724_v18 = vadd.f32 0.05243302, %v723_v63  ;;  %v1352_v32 = vor.u32 1.1754944e-38, %v1351_v47  ;;  %vm1347_vm13 = vmor %vm1345_vm9, %vm1346_vm12 }
  0xcd   : > { %v2275_v41 = vclamps-f32 %v1034_v20, 1.0  ;;  %v735_v60 = vadd.f32 0.112945676, %v734_v25  ;;  %v1040_v33 = vadd.f32 0.00028619796, %v1039_v30  ;;  %v2743_v52 = vmin.f32 %v1357_v8, 16.0  ;;  %v466_v8 = vpop.f32.mrf.mxu0 }
  0xce   : > { %v1957_v28 = vadd.f32 1.0, %v2267_v24  ;;  %v1344_v35 = vadd.f32 %v2359_v3, %v1343_v27  ;;  %v1648_v36 = vadd.f32 1.1283791, %v1647_v42  ;;  %v725_v37 = vmul.f32 %v724_v18, %v2651_v10 }
  0xcf   : > { %v1965_v34 = vadd.f32 1.0, %v2275_v41  ;;  %v736_v44 = vmul.f32 %v735_v60, %v2651_v10  ;;  %v1041_v45 = vmul.f32 %v1040_v33, %v2709_v57  ;;  %v1050_v48 = vmul.f32 3.8918573e-05, %v2709_v57 }
  0xd0   : > { %v1989_v40 = vmul.f32 %v1957_v28, %v2588_v55  ;;  %v1348_v50 = vsel %vm1347_vm13, %v2359_v3, %v1344_v35  ;;  %v726_v51 = vadd.f32 0.18741608, %v725_v37  ;;  %v1669_v0 = vand.u32 2147483647, %v2717_v19 }
  0xd1   : > { %v1997_v49 = vmul.f32 %v1965_v34, %v2640_v2  ;;  %v2361_v56 = vpop.eup %2360  ;;  %v1353_v55 = vsel %vm2723_vm11, %v1352_v32, %v1348_v50  ;;  %v737_v58 = vadd.f32 0.4994258, %v736_v44  ;;  %v1042_v31 = vadd.f32 0.0036580483, %v1041_v45 }
  0xd2   : > { %2021 = vst [vmem:[%s2733_s11] sm:$0xff] %v1989_v40  ;;  %v1051_v59 = vadd.f32 0.001143296, %v1050_v48  ;;  %v1354_v61 = vmul.f32 %v1353_v55, %v2693_v53  ;;  %v1661_v38 = vmul.f32 %v2361_v56, %v2717_v19  ;;  %v1671_v2 = vand.u32 2147483648, %v2717_v19 }
  0xd3   : > { %2029 = vst [vmem:[%s2733_s11 + $0x40] sm:$0xff] %v1997_v49  ;;  %v738_v39 = vmul.f32 %v737_v58, %v2651_v10  ;;  %v1043_v47 = vmul.f32 %v1042_v31, %v2709_v57  ;;  %v1359_v3 = vmul.f32 2.1237322e-06, %v2743_v52  ;;  %v727_v29 = vmul.f32 %v726_v51, %v2651_v10 }
  0xd4   : > { %v1052_v1 = vmul.f32 %v1051_v59, %v2709_v57  ;;  %v2283_v7 = vclamps-f32 %v1354_v61, 1.0  ;;  %v1662_v9 = vsub.f32 1.0, %v1661_v38  ;;  %v1370_v53 = vmul.f32 3.8918573e-05, %v2743_v52  ;;  %v486_v59 = vpop.f32.mrf.mxu1 }
  0xd5   : > { %vm1666_vm14 = vweird.f32 %v2361_v56  ;;  %v2759_v13 = vadd.f32 1.0, %v738_v39  ;;  %v1044_v14 = vadd.f32 0.05243302, %v1043_v47  ;;  %v1360_v63 = vadd.f32 0.00028619796, %v1359_v3 }
  0xd6   : > { %v1053_v42 = vadd.f32 0.014752088, %v1052_v1  ;;  %v1973_v16 = vadd.f32 1.0, %v2283_v7  ;;  %v1663_v17 = vmul.f32 %v2361_v56, %v1662_v9  ;;  %v570_v20 = vmul.f32 %v2541_v22, %v523_v4 }
  0xd7   : > { %v1649_v21 = vmul.f32 %v1648_v36, %v2586_v54  ;;  %vm1665_vm15 = vweird.f32 %v2717_v19  ;;  %v2765_v25 = vmul.f32 0.5, %v2599_v62  ;;  %2362 = vrcp.f32 %v2759_v13 }
  0xd8   : > { %v2005_v10 = vmul.f32 %v1973_v16, %v2645_v5  ;;  %v1664_v30 = vadd.f32 %v2361_v56, %v1663_v17  ;;  %v728_v24 = vadd.f32 1.1283791, %v727_v29  ;;  %v1054_v26 = vmul.f32 %v1053_v42, %v2709_v57  ;;  %vm1667_vm0 = vmor %vm1665_vm15, %vm1666_vm14 }
  0xd9   : > { %vm1670_vm1 = vcmp.eq.f32.partialorder %v1669_v0, 8.507059e+37  ;;  %v1672_v41 = vor.u32 1.1754944e-38, %v1671_v2  ;;  %v1361_v54 = vmul.f32 %v1360_v63, %v2743_v52  ;;  %v1371_v27 = vadd.f32 0.001143296, %v1370_v53 }
  0xda   : > { %2037 = vst [vmem:[%s2733_s11 + $0x80] sm:$0xff] %v2005_v10  ;;  %v1668_v19 = vsel %vm1667_vm0, %v2361_v56, %v1664_v30  ;;  %v1045_v62 = vmul.f32 %v1044_v14, %v2709_v57  ;;  %v1055_v18 = vadd.f32 0.112945676, %v1054_v26  ;;  %v2775_v28 = vadd.f32 %v2546_v23, %v570_v20 }
  0xdb   : > { %v1673_v5 = vsel %vm1670_vm1, %v1672_v41, %v1668_v19  ;;  %v1362_v32 = vadd.f32 0.0036580483, %v1361_v54  ;;  %v1372_v60 = vmul.f32 %v1371_v27, %v2743_v52  ;;  %v547_v33 = vmul.f32 %v2541_v22, %v466_v8 }
  0xdc   : > { %v1674_v34 = vmul.f32 %v1673_v5, %v1649_v21  ;;  %v729_v35 = vmul.f32 %v728_v24, %v2610_v12  ;;  %v2781_v36 = vmul.f32 0.5, %v2654_v11  ;;  %v1056_v37 = vmul.f32 %v1055_v18, %v2709_v57 }
  0xdd   : > { %v2363_v40 = vpop.eup %2362  ;;  %v749_v44 = vand.u32 2147483647, %v2759_v13  ;;  %v1363_v45 = vmul.f32 %v1362_v32, %v2743_v52  ;;  %v1373_v48 = vadd.f32 0.014752088, %v1372_v60  ;;  %v2787_v49 = vmul.f32 0.70710677, %v2775_v28 }
  0xde   : > { %v2291_v50 = vclamps-f32 %v1674_v34, 1.0  ;;  %v741_v51 = vmul.f32 %v2363_v40, %v2759_v13  ;;  %v1046_v56 = vadd.f32 0.18741608, %v1045_v62  ;;  %v2791_v12 = vadd.f32 %v2546_v23, %v547_v33 }
  0xdf   : > { %v1057_v11 = vadd.f32 0.4994258, %v1056_v37  ;;  %v1364_v55 = vadd.f32 0.05243302, %v1363_v45  ;;  %v1374_v58 = vmul.f32 %v1373_v48, %v2743_v52  ;;  %v1677_v31 = vmul.f32 %v2787_v49, %v2787_v49 }
  0xe0   : > { %v1981_v61 = vadd.f32 1.0, %v2291_v50  ;;  %v742_v38 = vsub.f32 1.0, %v741_v51  ;;  %vm746_vm2 = vweird.f32 %v2363_v40  ;;  %v751_v0 = vand.u32 2147483648, %v2759_v13 }
  0xe1   : > { %v1058_v2 = vmul.f32 %v1057_v11, %v2709_v57  ;;  %v1365_v39 = vmul.f32 %v1364_v55, %v2743_v52  ;;  %v1375_v47 = vadd.f32 0.112945676, %v1374_v58  ;;  %v2799_v1 = vmin.f32 %v1677_v31, 16.0 }
  0xe2   : > { %v2013_v3 = vmul.f32 %v1981_v61, %v2648_v6  ;;  %v743_v4 = vmul.f32 %v2363_v40, %v742_v38  ;;  %v2803_v7 = vmul.f32 0.70710677, %v2791_v12  ;;  %v555_v9 = vmul.f32 %v2541_v22, %v486_v59 }
  0xe3   : > { %v1047_v29 = vmul.f32 %v1046_v56, %v2709_v57  ;;  %v2807_v53 = vadd.f32 1.0, %v1058_v2  ;;  %v1376_v14 = vmul.f32 %v1375_v47, %v2743_v52  ;;  %v1679_v42 = vmul.f32 2.1237322e-06, %v2799_v1 }
  0xe4   : > { %2045 = vst [vmem:[%s2733_s11 + $0xc0] sm:$0xff] %v2013_v3  ;;  %v744_v16 = vadd.f32 %v2363_v40, %v743_v4  ;;  %vm745_vm3 = vweird.f32 %v2759_v13  ;;  %v752_v17 = vor.u32 1.1754944e-38, %v751_v0  ;;  %v1690_v6 = vmul.f32 3.8918573e-05, %v2799_v1 }
  0xe5   : > { %vm747_vm4 = vmor %vm745_vm3, %vm746_vm2  ;;  %2364 = vrcp.f32 %v2807_v53  ;;  %v1366_v63 = vadd.f32 0.18741608, %v1365_v39  ;;  %v757_v57 = vmul.f32 %v2803_v7, %v2803_v7  ;;  %v2819_v20 = vadd.f32 %v2546_v23, %v555_v9 }
  0xe6   : > { %v748_v21 = vsel %vm747_vm4, %v2363_v40, %v744_v16  ;;  %vm750_vm5 = vcmp.eq.f32.partialorder %v749_v44, 8.507059e+37  ;;  %v1377_v10 = vadd.f32 0.4994258, %v1376_v14  ;;  %v1680_v30 = vadd.f32 0.00028619796, %v1679_v42 }
  0xe7   : > { %v753_v24 = vsel %vm750_vm5, %v752_v17, %v748_v21  ;;  %v1048_v13 = vadd.f32 1.1283791, %v1047_v29  ;;  %v2822_v26 = vmul.f32 0.5, %v2658_v15  ;;  %v1691_v8 = vadd.f32 0.001143296, %v1690_v6 }
  0xe8   : > { %v754_v41 = vmul.f32 %v753_v24, %v729_v35  ;;  %v1069_v54 = vand.u32 2147483647, %v2807_v53  ;;  %v1378_v27 = vmul.f32 %v1377_v10, %v2743_v52  ;;  %v1681_v19 = vmul.f32 %v1680_v30, %v2799_v1 }
  0xe9   : > { %v1367_v62 = vmul.f32 %v1366_v63, %v2743_v52  ;;  %v1692_v18 = vmul.f32 %v1691_v8, %v2799_v1  ;;  %v2829_v5 = vmin.f32 %v757_v57, 16.0  ;;  %v2832_v32 = vmul.f32 0.70710677, %v2819_v20 }
  0xea   : > { %v2268_v60 = vclamps-f32 %v754_v41, 1.0  ;;  %v1071_v15 = vand.u32 2147483648, %v2807_v53  ;;  %v2835_v33 = vadd.f32 1.0, %v1378_v27  ;;  %v1682_v34 = vadd.f32 0.0036580483, %v1681_v19 }
  0xeb   : > { %v2365_v35 = vpop.eup %2364  ;;  %v1049_v37 = vmul.f32 %v1048_v13, %v2686_v43  ;;  %v1693_v40 = vadd.f32 0.014752088, %v1692_v18  ;;  %v759_v44 = vmul.f32 2.1237322e-06, %v2829_v5  ;;  %v770_v52 = vmul.f32 3.8918573e-05, %v2829_v5 }
  0xec   : > { %v1958_v45 = vadd.f32 1.0, %v2268_v60  ;;  %v1061_v48 = vmul.f32 %v2365_v35, %v2807_v53  ;;  %2366 = vrcp.f32 %v2835_v33  ;;  %v1077_v50 = vmul.f32 %v2832_v32, %v2832_v32 }
  0xed   : > { %vm1065_vm6 = vweird.f32 %v2807_v53  ;;  %vm2845_vm7 = vcmp.eq.f32.partialorder %v1069_v54, 8.507059e+37  ;;  %v1368_v43 = vadd.f32 1.1283791, %v1367_v62  ;;  %v1683_v56 = vmul.f32 %v1682_v34, %v2799_v1 }
  0xee   : > { %v1990_v11 = vmul.f32 %v1958_v45, %v2765_v25  ;;  %v1062_v55 = vsub.f32 1.0, %v1061_v48  ;;  %v1694_v58 = vmul.f32 %v1693_v40, %v2799_v1  ;;  %v760_v31 = vadd.f32 0.00028619796, %v759_v44 }
  0xef   : > { %vm1066_vm8 = vweird.f32 %v2365_v35  ;;  %v1072_v59 = vor.u32 1.1754944e-38, %v1071_v15  ;;  %v1684_v61 = vadd.f32 0.05243302, %v1683_v56  ;;  %v771_v38 = vadd.f32 0.001143296, %v770_v52  ;;  %v506_v15 = vpop.f32.mrf.mxu2  ;;  %v526_v56 = vpop.f32.mrf.mxu3 }
  0xf0   : > { %2022 = vst [vmem:[%s2733_s11 + $0x8] sm:$0xff] %v1990_v11  ;;  %v1063_v0 = vmul.f32 %v2365_v35, %v1062_v55  ;;  %v1695_v2 = vadd.f32 0.112945676, %v1694_v58  ;;  %v761_v39 = vmul.f32 %v760_v31, %v2829_v5  ;;  %v2854_v47 = vmin.f32 %v1077_v50, 16.0  ;;  %vm1067_vm10 = vmor %vm1065_vm6, %vm1066_vm8 }
  0xf1   : > { %v1369_v3 = vmul.f32 %v1368_v43, %v2690_v46  ;;  %vm1385_vm9 = vweird.f32 %v2835_v33  ;;  %v1685_v25 = vmul.f32 %v1684_v61, %v2799_v1  ;;  %v772_v4 = vmul.f32 %v771_v38, %v2829_v5 }
  0xf2   : > { %v2367_v9 = vpop.eup %2366  ;;  %v1064_v29 = vadd.f32 %v2365_v35, %v1063_v0  ;;  %v1696_v14 = vmul.f32 %v1695_v2, %v2799_v1  ;;  %v762_v42 = vadd.f32 0.0036580483, %v761_v39  ;;  %v1079_v16 = vmul.f32 2.1237322e-06, %v2854_v47 }
  0xf3   : > { %v1381_v17 = vmul.f32 %v2367_v9, %v2835_v33  ;;  %v1389_v46 = vand.u32 2147483647, %v2835_v33  ;;  %v1391_v6 = vand.u32 2147483648, %v2835_v33  ;;  %v773_v63 = vadd.f32 0.014752088, %v772_v4 }
  0xf4   : > { %v1068_v57 = vsel %vm1067_vm10, %v2365_v35, %v1064_v29  ;;  %v1697_v21 = vadd.f32 0.4994258, %v1696_v14  ;;  %v763_v10 = vmul.f32 %v762_v42, %v2829_v5  ;;  %v1080_v30 = vadd.f32 0.00028619796, %v1079_v16 }
  0xf5   : > { %v1073_v24 = vsel %vm2845_vm7, %v1072_v59, %v1068_v57  ;;  %v1382_v13 = vsub.f32 1.0, %v1381_v17  ;;  %v1686_v8 = vadd.f32 0.18741608, %v1685_v25  ;;  %v774_v53 = vmul.f32 %v773_v63, %v2829_v5  ;;  %v468_v63 = vpop.f32.mrf.mxu0 }
  0xf6   : > { %v1074_v41 = vmul.f32 %v1073_v24, %v1049_v37  ;;  %v1698_v54 = vmul.f32 %v1697_v21, %v2799_v1  ;;  %v764_v27 = vadd.f32 0.05243302, %v763_v10  ;;  %v1081_v19 = vmul.f32 %v1080_v30, %v2854_v47 }
  0xf7   : > { %v1383_v62 = vmul.f32 %v2367_v9, %v1382_v13  ;;  %vm1386_vm11 = vweird.f32 %v2367_v9  ;;  %v775_v18 = vadd.f32 0.112945676, %v774_v53  ;;  %v1090_v60 = vmul.f32 3.8918573e-05, %v2854_v47 }
  0xf8   : > { %v2276_v34 = vclamps-f32 %v1074_v41, 1.0  ;;  %v2875_v35 = vadd.f32 1.0, %v1698_v54  ;;  %v765_v40 = vmul.f32 %v764_v27, %v2829_v5  ;;  %v1082_v44 = vadd.f32 0.0036580483, %v1081_v19  ;;  %vm1387_vm12 = vmor %vm1385_vm9, %vm1386_vm11 }
  0xf9   : > { %v1384_v52 = vadd.f32 %v2367_v9, %v1383_v62  ;;  %v1392_v45 = vor.u32 1.1754944e-38, %v1391_v6  ;;  %v1687_v37 = vmul.f32 %v1686_v8, %v2799_v1  ;;  %v776_v48 = vmul.f32 %v775_v18, %v2829_v5 }
  0xfa   : > { %v1966_v50 = vadd.f32 1.0, %v2276_v34  ;;  %2368 = vrcp.f32 %v2875_v35  ;;  %v1091_v51 = vadd.f32 0.001143296, %v1090_v60  ;;  %v563_v43 = vmul.f32 %v2541_v22, %v506_v15  ;;  %v488_v60 = vpop.f32.mrf.mxu1 }
  0xfb   : > { %v1388_v11 = vsel %vm1387_vm12, %v2367_v9, %v1384_v52  ;;  %vm1390_vm13 = vcmp.eq.f32.partialorder %v1389_v46, 8.507059e+37  ;;  %v766_v55 = vadd.f32 0.18741608, %v765_v40  ;;  %v777_v58 = vadd.f32 0.4994258, %v776_v48 }
  0xfc   : > { %v1998_v31 = vmul.f32 %v1966_v50, %v2781_v36  ;;  %v1393_v1 = vsel %vm1390_vm13, %v1392_v45, %v1388_v11  ;;  %v2886_v59 = vmul.f32 0.5, %v2775_v28  ;;  %v1083_v33 = vmul.f32 %v1082_v44, %v2854_v47 }
  0xfd   : > { %v1394_v61 = vmul.f32 %v1393_v1, %v1369_v3  ;;  %v1688_v38 = vadd.f32 1.1283791, %v1687_v37  ;;  %v778_v0 = vmul.f32 %v777_v58, %v2829_v5  ;;  %v571_v2 = vmul.f32 %v2541_v22, %v526_v56 }
  0xfe   : > { %2030 = vst [vmem:[%s2733_s11 + $0x48] sm:$0xff] %v1998_v31  ;;  %v2893_v39 = vmul.f32 0.5, %v2791_v12  ;;  %v767_v25 = vmul.f32 %v766_v55, %v2829_v5  ;;  %v1092_v36 = vmul.f32 %v1091_v51, %v2854_v47  ;;  %v599_v4 = vadd.f32 %v2546_v23, %v563_v43 }
  0xff   : > { %v2284_v28 = vclamps-f32 %v1394_v61, 1.0  ;;  %v1709_v9 = vand.u32 2147483647, %v2875_v35  ;;  %v2899_v29 = vadd.f32 1.0, %v778_v0  ;;  %v2902_v3 = vmul.f32 0.5, %v2819_v20 }
 0x100   : > { %v2369_v14 = vpop.eup %2368  ;;  %v1084_v42 = vadd.f32 0.05243302, %v1083_v33  ;;  %v1093_v16 = vadd.f32 0.014752088, %v1092_v36  ;;  %v2904_v17 = vmul.f32 0.70710677, %v599_v4  ;;  %v1689_v5 = vmul.f32 %v1688_v38, %v2787_v49 }
 0x101   : > { %v1974_v12 = vadd.f32 1.0, %v2284_v28  ;;  %v1701_v46 = vmul.f32 %v2369_v14, %v2875_v35  ;;  %v2909_v6 = vadd.f32 %v2546_v23, %v571_v2  ;;  %vm1705_vm14 = vweird.f32 %v2875_v35 }
 0x102   : > { %v1711_v20 = vand.u32 2147483648, %v2875_v35  ;;  %v768_v57 = vadd.f32 1.1283791, %v767_v25  ;;  %2370 = vrcp.f32 %v2899_v29  ;;  %vm2915_vm15 = vcmp.eq.f32.partialorder %v1709_v9, 8.507059e+37 }
 0x103   : > { %v2006_v21 = vmul.f32 %v1974_v12, %v2822_v26  ;;  %v1702_v10 = vsub.f32 1.0, %v1701_v46  ;;  %v1094_v49 = vmul.f32 %v1093_v16, %v2854_v47  ;;  %v789_v24 = vand.u32 2147483647, %v2899_v29 }
 0x104   : > { %v1085_v13 = vmul.f32 %v1084_v42, %v2854_v47  ;;  %v1397_v8 = vmul.f32 %v2904_v17, %v2904_v17  ;;  %v548_v53 = vmul.f32 %v2541_v22, %v468_v63  ;;  %vm1706_vm0 = vweird.f32 %v2369_v14 }
 0x105   : > { %2038 = vst [vmem:[%s2733_s11 + $0x88] sm:$0xff] %v2006_v21  ;;  %v1703_v41 = vmul.f32 %v2369_v14, %v1702_v10  ;;  %v1095_v26 = vadd.f32 0.112945676, %v1094_v49  ;;  %v2927_v54 = vmul.f32 0.70710677, %v2909_v6  ;;  %v1712_v27 = vor.u32 1.1754944e-38, %v1711_v20  ;;  %vm1707_vm2 = vmor %vm1705_vm14, %vm1706_vm0 }
 0x106   : > { %v769_v19 = vmul.f32 %v768_v57, %v2803_v7  ;;  %v2930_v62 = vmul.f32 0.5, %v599_v4  ;;  %v2932_v18 = vmin.f32 %v1397_v8, 16.0  ;;  %vm785_vm1 = vweird.f32 %v2899_v29 }
 0x107   : > { %v1704_v15 = vadd.f32 %v2369_v14, %v1703_v41  ;;  %v791_v34 = vand.u32 2147483648, %v2899_v29  ;;  %v1096_v40 = vmul.f32 %v1095_v26, %v2854_v47  ;;  %v1717_v44 = vmul.f32 %v2927_v54, %v2927_v54 }
 0x108   : > { %v2371_v52 = vpop.eup %2370  ;;  %v1086_v7 = vadd.f32 0.18741608, %v1085_v13  ;;  %v1399_v45 = vmul.f32 2.1237322e-06, %v2932_v18  ;;  %v1410_v37 = vmul.f32 3.8918573e-05, %v2932_v18  ;;  %v2944_v48 = vadd.f32 %v2546_v23, %v548_v53 }
 0x109   : > { %v1708_v50 = vsel %vm1707_vm2, %v2369_v14, %v1704_v15  ;;  %v781_v51 = vmul.f32 %v2371_v52, %v2899_v29  ;;  %vm2947_vm3 = vcmp.eq.f32.partialorder %v789_v24, 8.507059e+37  ;;  %v556_v56 = vmul.f32 %v2541_v22, %v488_v60  ;;  %v508_v24 = vpop.f32.mrf.mxu2 }
 0x10a   : > { %v1713_v35 = vsel %vm2915_vm15, %v1712_v27, %v1708_v50  ;;  %v1097_v11 = vadd.f32 0.4994258, %v1096_v40  ;;  %v1400_v55 = vadd.f32 0.00028619796, %v1399_v45  ;;  %v1411_v58 = vadd.f32 0.001143296, %v1410_v37 }
 0x10b   : > { %v1714_v31 = vmul.f32 %v1713_v35, %v1689_v5  ;;  %v782_v1 = vsub.f32 1.0, %v781_v51  ;;  %vm786_vm4 = vweird.f32 %v2371_v52  ;;  %v2954_v33 = vmin.f32 %v1717_v44, 16.0 }
 0x10c   : > { %v1098_v61 = vmul.f32 %v1097_v11, %v2854_v47  ;;  %v1401_v38 = vmul.f32 %v1400_v55, %v2932_v18  ;;  %v1412_v0 = vmul.f32 %v1411_v58, %v2932_v18  ;;  %v2960_v2 = vmul.f32 0.70710677, %v2944_v48  ;;  %vm787_vm5 = vmor %vm785_vm1, %vm786_vm4 }
 0x10d   : > { %v2292_v25 = vclamps-f32 %v1714_v31, 1.0  ;;  %v783_v36 = vmul.f32 %v2371_v52, %v782_v1  ;;  %v1719_v4 = vmul.f32 2.1237322e-06, %v2954_v33  ;;  %v1730_v28 = vmul.f32 3.8918573e-05, %v2954_v33 }
 0x10e   : > { %v1087_v9 = vmul.f32 %v1086_v7, %v2854_v47  ;;  %v2965_v14 = vadd.f32 1.0, %v1098_v61  ;;  %v1402_v42 = vadd.f32 0.0036580483, %v1401_v38  ;;  %v1413_v16 = vadd.f32 0.014752088, %v1412_v0 }
 0x10f   : > { %v1982_v12 = vadd.f32 1.0, %v2292_v25  ;;  %v784_v5 = vadd.f32 %v2371_v52, %v783_v36  ;;  %v1720_v46 = vadd.f32 0.00028619796, %v1719_v4  ;;  %v1731_v63 = vadd.f32 0.001143296, %v1730_v28 }
 0x110   : > { %v792_v20 = vor.u32 1.1754944e-38, %v791_v34  ;;  %2372 = vrcp.f32 %v2965_v14  ;;  %v797_v57 = vmul.f32 %v2960_v2, %v2960_v2  ;;  %v2974_v47 = vadd.f32 %v2546_v23, %v556_v56 }
 0x111   : > { %v2014_v21 = vmul.f32 %v1982_v12, %v2886_v59  ;;  %v788_v10 = vsel %vm787_vm5, %v2371_v52, %v784_v5  ;;  %v1403_v30 = vmul.f32 %v1402_v42, %v2932_v18  ;;  %v1414_v49 = vmul.f32 %v1413_v16, %v2932_v18 }
 0x112   : > { %v793_v29 = vsel %vm2947_vm3, %v792_v20, %v788_v10  ;;  %v1088_v13 = vadd.f32 1.1283791, %v1087_v9  ;;  %v2982_v8 = vmul.f32 0.5, %v2909_v6  ;;  %v1721_v53 = vmul.f32 %v1720_v46, %v2954_v33 }
 0x113   : > { %2046 = vst [vmem:[%s2733_s11 + $0xc8] sm:$0xff] %v2014_v21  ;;  %v794_v23 = vmul.f32 %v793_v29, %v769_v19  ;;  %v1404_v41 = vadd.f32 0.05243302, %v1403_v30  ;;  %v1415_v26 = vadd.f32 0.112945676, %v1414_v49  ;;  %v1732_v59 = vmul.f32 %v1731_v63, %v2954_v33 }
 0x114   : > { %v1722_v27 = vadd.f32 0.0036580483, %v1721_v53  ;;  %v2987_v60 = vmin.f32 %v797_v57, 16.0  ;;  %v2990_v15 = vmul.f32 0.70710677, %v2974_v47  ;;  %v2993_v34 = vmul.f32 %v2541_v22, %v508_v24 }
 0x115   : > { %v2269_v40 = vclamps-f32 %v794_v23, 1.0  ;;  %v1405_v6 = vmul.f32 %v1404_v41, %v2932_v18  ;;  %v1416_v44 = vmul.f32 %v1415_v26, %v2932_v18  ;;  %v1733_v52 = vadd.f32 0.014752088, %v1732_v59 }
 0x116   : > { %v2373_v19 = vpop.eup %2372  ;;  %v1109_v7 = vand.u32 2147483647, %v2965_v14  ;;  %v1723_v45 = vmul.f32 %v1722_v27, %v2954_v33  ;;  %v799_v37 = vmul.f32 2.1237322e-06, %v2987_v60  ;;  %v810_v50 = vmul.f32 3.8918573e-05, %v2987_v60 }
 0x117   : > { %v1959_v51 = vadd.f32 1.0, %v2269_v40  ;;  %v1101_v22 = vmul.f32 %v2373_v19, %v2965_v14  ;;  %v1406_v43 = vadd.f32 0.18741608, %v1405_v6  ;;  %v1117_v56 = vmul.f32 %v2990_v15, %v2990_v15 }
 0x118   : > { %v1417_v35 = vadd.f32 0.4994258, %v1416_v44  ;;  %v1724_v11 = vadd.f32 0.05243302, %v1723_v45  ;;  %v1734_v55 = vmul.f32 %v1733_v52, %v2954_v33  ;;  %v800_v58 = vadd.f32 0.00028619796, %v799_v37 }
 0x119   : > { %v1991_v31 = vmul.f32 %v1959_v51, %v2893_v39  ;;  %v1102_v1 = vsub.f32 1.0, %v1101_v22  ;;  %v1111_v61 = vand.u32 2147483648, %v2965_v14  ;;  %v811_v38 = vadd.f32 0.001143296, %v810_v50  ;;  %v3037_v52 = vld [vmem:[%s3764_s3] ss:$0 sm:$0xff] }
 0x11a   : > { %v1418_v0 = vmul.f32 %v1417_v35, %v2932_v18  ;;  %v1725_v25 = vmul.f32 %v1724_v11, %v2954_v33  ;;  %v1735_v36 = vadd.f32 0.112945676, %v1734_v55  ;;  %v801_v4 = vmul.f32 %v800_v58, %v2987_v60 }
 0x11b   : > { %2023 = vst [vmem:[%s2733_s11 + $0x10] sm:$0xff] %v1991_v31  ;;  %v1103_v28 = vmul.f32 %v2373_v19, %v1102_v1  ;;  %vm1106_vm6 = vweird.f32 %v2373_v19  ;;  %v812_v9 = vmul.f32 %v811_v38, %v2987_v60  ;;  %v3012_v42 = vmin.f32 %v1117_v56, 16.0  ;;  %v528_v31 = vpop.f32.mrf.mxu3 }
 0x11c   : > { %v1407_v39 = vmul.f32 %v1406_v43, %v2932_v18  ;;  %v3015_v16 = vadd.f32 1.0, %v1418_v0  ;;  %v1736_v12 = vmul.f32 %v1735_v36, %v2954_v33  ;;  %v802_v5 = vadd.f32 0.0036580483, %v801_v4 }
 0x11d   : > { %v1089_v46 = vmul.f32 %v1088_v13, %v2832_v32  ;;  %v1104_v63 = vadd.f32 %v2373_v19, %v1103_v28  ;;  %vm1105_vm7 = vweird.f32 %v2965_v14  ;;  %v813_v20 = vadd.f32 0.014752088, %v812_v9 }
 0x11e   : > { %vm1107_vm8 = vmor %vm1105_vm7, %vm1106_vm6  ;;  %v1112_v57 = vor.u32 1.1754944e-38, %v1111_v61  ;;  %2374 = vrcp.f32 %v3015_v16  ;;  %v1726_v21 = vadd.f32 0.18741608, %v1725_v25  ;;  %v1119_v10 = vmul.f32 2.1237322e-06, %v3012_v42 }
 0x11f   : > { %v1108_v30 = vsel %vm1107_vm8, %v2373_v19, %v1104_v63  ;;  %vm1110_vm9 = vcmp.eq.f32.partialorder %v1109_v7, 8.507059e+37  ;;  %v1737_v18 = vadd.f32 0.4994258, %v1736_v12  ;;  %v803_v49 = vmul.f32 %v802_v5, %v2987_v60 }
 0x120   : > { %v1113_v24 = vsel %vm1110_vm9, %v1112_v57, %v1108_v30  ;;  %v1408_v29 = vadd.f32 1.1283791, %v1407_v39  ;;  %v3024_v32 = vmul.f32 0.5, %v2944_v48  ;;  %v814_v14 = vmul.f32 %v813_v20, %v2987_v60  ;;  %v3068_v39 = vld [vmem:[%s3763_s2] ss:$0 sm:$0xff] }
 0x121   : > { %v1114_v13 = vmul.f32 %v1113_v24, %v1089_v46  ;;  %v1429_v53 = vand.u32 2147483647, %v3015_v16  ;;  %v1738_v23 = vmul.f32 %v1737_v18, %v2954_v33  ;;  %v804_v41 = vadd.f32 0.05243302, %v803_v49  ;;  %v471_v24 = vpop.f32.mrf.mxu0 }
 0x122   : > { %v1727_v26 = vmul.f32 %v1726_v21, %v2954_v33  ;;  %v815_v59 = vadd.f32 0.112945676, %v814_v14  ;;  %v1120_v27 = vadd.f32 0.00028619796, %v1119_v10  ;;  %v1130_v40 = vmul.f32 3.8918573e-05, %v3012_v42 }
 0x123   : > { %v2277_v6 = vclamps-f32 %v1114_v13, 1.0  ;;  %v3031_v44 = vadd.f32 1.0, %v1738_v23  ;;  %v805_v48 = vmul.f32 %v804_v41, %v2987_v60  ;;  %v3041_v19 = vadd.f32 %v3037_v52, %v2993_v34 }
 0x124   : > { %v2375_v7 = vpop.eup %2374  ;;  %v1409_v33 = vmul.f32 %v1408_v29, %v2904_v17  ;;  %v816_v45 = vmul.f32 %v815_v59, %v2987_v60  ;;  %v1121_v37 = vmul.f32 %v1120_v27, %v3012_v42  ;;  %v1131_v50 = vadd.f32 0.001143296, %v1130_v40 }
 0x125   : > { %v1967_v51 = vadd.f32 1.0, %v2277_v6  ;;  %v1421_v22 = vmul.f32 %v2375_v7, %v3015_v16  ;;  %vm1425_vm10 = vweird.f32 %v3015_v16  ;;  %2376 = vrcp.f32 %v3031_v44 }
 0x126   : > { %vm3049_vm11 = vcmp.eq.f32.partialorder %v1429_v53, 8.507059e+37  ;;  %v1431_v34 = vand.u32 2147483648, %v3015_v16  ;;  %v1728_v17 = vadd.f32 1.1283791, %v1727_v26  ;;  %v806_v56 = vadd.f32 0.18741608, %v805_v48 }
 0x127   : > { %v1999_v35 = vmul.f32 %v1967_v51, %v2902_v3  ;;  %v1422_v11 = vsub.f32 1.0, %v1421_v22  ;;  %v817_v55 = vadd.f32 0.4994258, %v816_v45  ;;  %v1122_v58 = vadd.f32 0.0036580483, %v1121_v37 }
 0x128   : > { %vm1426_vm12 = vweird.f32 %v2375_v7  ;;  %v1749_v1 = vand.u32 2147483647, %v3031_v44  ;;  %v807_v61 = vmul.f32 %v806_v56, %v2987_v60  ;;  %v1132_v38 = vmul.f32 %v1131_v50, %v3012_v42 }
 0x129   : > { %2031 = vst [vmem:[%s2733_s11 + $0x50] sm:$0xff] %v1999_v35  ;;  %v1423_v0 = vmul.f32 %v2375_v7, %v1422_v11  ;;  %v818_v25 = vmul.f32 %v817_v55, %v2987_v60  ;;  %v1123_v36 = vmul.f32 %v1122_v58, %v3012_v42  ;;  %v3062_v4 = vmul.f32 0.70710677, %v3041_v19  ;;  %vm1427_vm13 = vmor %vm1425_vm10, %vm1426_vm12 }
 0x12a   : > { %v1432_v3 = vor.u32 1.1754944e-38, %v1431_v34  ;;  %v1751_v28 = vand.u32 2147483648, %v3031_v44  ;;  %v1133_v9 = vadd.f32 0.014752088, %v1132_v38  ;;  %v572_v12 = vmul.f32 %v3068_v39, %v528_v31 }
 0x12b   : > { %v2377_v5 = vpop.eup %2376  ;;  %v1424_v46 = vadd.f32 %v2375_v7, %v1423_v0  ;;  %v3071_v63 = vadd.f32 1.0, %v818_v25  ;;  %v1124_v60 = vadd.f32 0.05243302, %v1123_v36  ;;  %v1437_v20 = vmul.f32 %v3062_v4, %v3062_v4 }
 0x12c   : > { %v1729_v57 = vmul.f32 %v1728_v17, %v2927_v54  ;;  %v1741_v21 = vmul.f32 %v2377_v5, %v3031_v44  ;;  %vm1745_vm14 = vweird.f32 %v3031_v44  ;;  %v1134_v10 = vmul.f32 %v1133_v9, %v3012_v42 }
 0x12d   : > { %v1428_v30 = vsel %vm1427_vm13, %v2375_v7, %v1424_v46  ;;  %vm3082_vm15 = vcmp.eq.f32.partialorder %v1749_v1, 8.507059e+37  ;;  %v808_v49 = vadd.f32 1.1283791, %v807_v61  ;;  %2378 = vrcp.f32 %v3071_v63 }
 0x12e   : > { %v1433_v16 = vsel %vm3049_vm11, %v1432_v3, %v1428_v30  ;;  %v1742_v29 = vsub.f32 1.0, %v1741_v21  ;;  %v1125_v54 = vmul.f32 %v1124_v60, %v3012_v42  ;;  %v3091_v14 = vadd.f32 %v3037_v52, %v572_v12  ;;  %v491_v12 = vpop.f32.mrf.mxu1 }
 0x12f   : > { %v1434_v13 = vmul.f32 %v1433_v16, %v1409_v33  ;;  %v1752_v53 = vor.u32 1.1754944e-38, %v1751_v28  ;;  %v1135_v23 = vadd.f32 0.112945676, %v1134_v10  ;;  %v3093_v41 = vmin.f32 %v1437_v20, 16.0 }
 0x130   : > { %v1743_v26 = vmul.f32 %v2377_v5, %v1742_v29  ;;  %vm1746_vm0 = vweird.f32 %v2377_v5  ;;  %v1126_v59 = vadd.f32 0.18741608, %v1125_v54  ;;  %v549_v27 = vmul.f32 %v3068_v39, %v471_v24 }
 0x131   : > { %v2285_v40 = vclamps-f32 %v1434_v13, 1.0  ;;  %v809_v6 = vmul.f32 %v808_v49, %v2960_v2  ;;  %v1136_v48 = vmul.f32 %v1135_v23, %v3012_v42  ;;  %v1439_v7 = vmul.f32 2.1237322e-06, %v3093_v41  ;;  %vm1747_vm1 = vmor %vm1745_vm14, %vm1746_vm0 }
 0x132   : > { %v1744_v45 = vadd.f32 %v2377_v5, %v1743_v26  ;;  %v829_v37 = vand.u32 2147483647, %v3071_v63  ;;  %v1450_v33 = vmul.f32 3.8918573e-05, %v3093_v41  ;;  %v3102_v50 = vmul.f32 0.70710677, %v3091_v14 }
 0x133   : > { %v2379_v51 = vpop.eup %2378  ;;  %v1975_v22 = vadd.f32 1.0, %v2285_v40  ;;  %v1127_v2 = vmul.f32 %v1126_v59, %v3012_v42  ;;  %v1137_v43 = vadd.f32 0.4994258, %v1136_v48  ;;  %v1440_v34 = vadd.f32 0.00028619796, %v1439_v7 }
 0x134   : > { %v1748_v17 = vsel %vm1747_vm1, %v2377_v5, %v1744_v45  ;;  %v821_v56 = vmul.f32 %v2379_v51, %v3071_v63  ;;  %v831_v35 = vand.u32 2147483648, %v3071_v63  ;;  %v3110_v11 = vadd.f32 %v3037_v52, %v549_v27 }
 0x135   : > { %v2007_v55 = vmul.f32 %v1975_v22, %v2930_v62  ;;  %v1753_v58 = vsel %vm3082_vm15, %v1752_v53, %v1748_v17  ;;  %v1138_v44 = vmul.f32 %v1137_v43, %v3012_v42  ;;  %v1441_v31 = vmul.f32 %v1440_v34, %v3093_v41 }
 0x136   : > { %v1754_v1 = vmul.f32 %v1753_v58, %v1729_v57  ;;  %v822_v61 = vsub.f32 1.0, %v821_v56  ;;  %vm826_vm2 = vweird.f32 %v2379_v51  ;;  %v1451_v38 = vadd.f32 0.001143296, %v1450_v33 }
 0x137   : > { %2039 = vst [vmem:[%s2733_s11 + $0x90] sm:$0xff] %v2007_v55  ;;  %v1128_v0 = vadd.f32 1.1283791, %v1127_v2  ;;  %v3118_v25 = vadd.f32 1.0, %v1138_v44  ;;  %v1442_v36 = vadd.f32 0.0036580483, %v1441_v31  ;;  %v1757_v3 = vmul.f32 %v3102_v50, %v3102_v50  ;;  %v511_v31 = vpop.f32.mrf.mxu2 }
 0x138   : > { %v2293_v62 = vclamps-f32 %v1754_v1, 1.0  ;;  %v823_v28 = vmul.f32 %v2379_v51, %v822_v61  ;;  %v1452_v9 = vmul.f32 %v1451_v38, %v3093_v41  ;;  %v3124_v42 = vmul.f32 0.70710677, %v3110_v11 }
 0x139   : > { %vm825_vm3 = vweird.f32 %v3071_v63  ;;  %vm3127_vm4 = vcmp.eq.f32.partialorder %v829_v37, 8.507059e+37  ;;  %v832_v46 = vor.u32 1.1754944e-38, %v831_v35  ;;  %2380 = vrcp.f32 %v3118_v25 }
 0x13a   : > { %v1983_v60 = vadd.f32 1.0, %v2293_v62  ;;  %v824_v20 = vadd.f32 %v2379_v51, %v823_v28  ;;  %v1443_v57 = vmul.f32 %v1442_v36, %v3093_v41  ;;  %v1453_v21 = vadd.f32 0.014752088, %v1452_v9  ;;  %vm827_vm5 = vmor %vm825_vm3, %vm826_vm2 }
 0x13b   : > { %v3135_v10 = vmul.f32 %v1128_v0, %v2990_v15  ;;  %v3137_v30 = vmin.f32 %v1757_v3, 16.0  ;;  %v837_v63 = vmul.f32 %v3124_v42, %v3124_v42  ;;  %v557_v18 = vmul.f32 %v3068_v39, %v491_v12 }
 0x13c   : > { %v2015_v49 = vmul.f32 %v1983_v60, %v2982_v8  ;;  %v828_v24 = vsel %vm827_vm5, %v2379_v51, %v824_v20  ;;  %v1444_v16 = vadd.f32 0.05243302, %v1443_v57  ;;  %v1454_v29 = vmul.f32 %v1453_v21, %v3093_v41 }
 0x13d   : > { %v833_v54 = vsel %vm3127_vm4, %v832_v46, %v828_v24  ;;  %v1759_v13 = vmul.f32 2.1237322e-06, %v3137_v30  ;;  %v1770_v15 = vmul.f32 3.8918573e-05, %v3137_v30  ;;  %v3148_v53 = vmin.f32 %v837_v63, 16.0 }
 0x13e   : > { %2047 = vst [vmem:[%s2733_s11 + $0xd0] sm:$0xff] %v2015_v49  ;;  %v834_v23 = vmul.f32 %v833_v54, %v809_v6  ;;  %v1149_v26 = vand.u32 2147483647, %v3118_v25  ;;  %v1151_v59 = vand.u32 2147483648, %v3118_v25  ;;  %v1455_v8 = vadd.f32 0.112945676, %v1454_v29 }
 0x13f   : > { %v2381_v27 = vpop.eup %2380  ;;  %vm1145_vm6 = vweird.f32 %v3118_v25  ;;  %v1760_v40 = vadd.f32 0.00028619796, %v1759_v13  ;;  %v1771_v48 = vadd.f32 0.001143296, %v1770_v15  ;;  %v839_v7 = vmul.f32 2.1237322e-06, %v3148_v53 }
 0x140   : > { %v2270_v45 = vclamps-f32 %v834_v23, 1.0  ;;  %v1141_v37 = vmul.f32 %v2381_v27, %v3118_v25  ;;  %v1445_v33 = vmul.f32 %v1444_v16, %v3093_v41  ;;  %v3158_v51 = vadd.f32 %v3037_v52, %v557_v18 }
 0x141   : > { %v1456_v6 = vmul.f32 %v1455_v8, %v3093_v41  ;;  %v1761_v22 = vmul.f32 %v1760_v40, %v3137_v30  ;;  %v1772_v2 = vmul.f32 %v1771_v48, %v3137_v30  ;;  %v840_v43 = vadd.f32 0.00028619796, %v839_v7 }
 0x142   : > { %v1960_v34 = vadd.f32 1.0, %v2270_v45  ;;  %v1142_v17 = vsub.f32 1.0, %v1141_v37  ;;  %vm1146_vm7 = vweird.f32 %v2381_v27  ;;  %v850_v56 = vmul.f32 3.8918573e-05, %v3148_v53 }
 0x143   : > { %v1457_v35 = vadd.f32 0.4994258, %v1456_v6  ;;  %v1762_v55 = vadd.f32 0.0036580483, %v1761_v22  ;;  %v1773_v58 = vadd.f32 0.014752088, %v1772_v2  ;;  %v841_v44 = vmul.f32 %v840_v43, %v3148_v53  ;;  %vm1147_vm8 = vmor %vm1145_vm6, %vm1146_vm7 }
 0x144   : > { %v1992_v1 = vmul.f32 %v1960_v34, %v3024_v32  ;;  %v1143_v61 = vmul.f32 %v2381_v27, %v1142_v17  ;;  %v1446_v38 = vadd.f32 0.18741608, %v1445_v33  ;;  %v851_v0 = vadd.f32 0.001143296, %v850_v56 }
 0x145   : > { %v1458_v36 = vmul.f32 %v1457_v35, %v3093_v41  ;;  %v1763_v3 = vmul.f32 %v1762_v55, %v3137_v30  ;;  %v1774_v62 = vmul.f32 %v1773_v58, %v3137_v30  ;;  %v842_v28 = vadd.f32 0.0036580483, %v841_v44 }
 0x146   : > { %2024 = vst [vmem:[%s2733_s11 + $0x18] sm:$0xff] %v1992_v1  ;;  %v1144_v9 = vadd.f32 %v2381_v27, %v1143_v61  ;;  %v1152_v12 = vor.u32 1.1754944e-38, %v1151_v59  ;;  %v852_v5 = vmul.f32 %v851_v0, %v3148_v53  ;;  %v565_v46 = vmul.f32 %v3068_v39, %v511_v31 }
 0x147   : > { %v3175_v32 = vadd.f32 1.0, %v1458_v36  ;;  %v1764_v60 = vadd.f32 0.05243302, %v1763_v3  ;;  %v1775_v20 = vadd.f32 0.112945676, %v1774_v62  ;;  %v843_v57 = vmul.f32 %v842_v28, %v3148_v53  ;;  %v531_v62 = vpop.f32.mrf.mxu3 }
 0x148   : > { %v1148_v21 = vsel %vm1147_vm8, %v2381_v27, %v1144_v9  ;;  %vm1150_vm9 = vcmp.eq.f32.partialorder %v1149_v26, 8.507059e+37  ;;  %v853_v63 = vadd.f32 0.014752088, %v852_v5  ;;  %v3179_v18 = vmul.f32 0.70710677, %v3158_v51 }
 0x149   : > { %v624_v49 = vmul.f32 0.5, %v2974_v47  ;;  %v1153_v24 = vsel %vm1150_vm9, %v1152_v12, %v1148_v21  ;;  %v1447_v16 = vmul.f32 %v1446_v38, %v3093_v41  ;;  %2382 = vrcp.f32 %v3175_v32 }
 0x14a   : > { %v1154_v25 = vmul.f32 %v1153_v24, %v3135_v10  ;;  %v1765_v29 = vmul.f32 %v1764_v60, %v3137_v30  ;;  %v1776_v54 = vmul.f32 %v1775_v20, %v3137_v30  ;;  %v3188_v13 = vadd.f32 %v3037_v52, %v565_v46 }
 0x14b   : > { %v3191_v15 = vmul.f32 0.5, %v3041_v19  ;;  %v844_v23 = vadd.f32 0.05243302, %v843_v57  ;;  %v854_v47 = vmul.f32 %v853_v63, %v3148_v53  ;;  %v1157_v41 = vmul.f32 %v3179_v18, %v3179_v18 }
 0x14c   : > { %v2278_v26 = vclamps-f32 %v1154_v25, 1.0  ;;  %v3197_v59 = vmul.f32 0.5, %v3091_v14  ;;  %v1766_v10 = vadd.f32 0.18741608, %v1765_v29  ;;  %v1777_v8 = vadd.f32 0.4994258, %v1776_v54 }
 0x14d   : > { %v1448_v27 = vadd.f32 1.1283791, %v1447_v16  ;;  %v845_v40 = vmul.f32 %v844_v23, %v3148_v53  ;;  %v855_v48 = vadd.f32 0.112945676, %v854_v47  ;;  %v3200_v7 = vmin.f32 %v1157_v41, 16.0 }
 0x14e   : > { %v1968_v19 = vadd.f32 1.0, %v2278_v26  ;;  %v1469_v45 = vand.u32 2147483647, %v3175_v32  ;;  %v1778_v37 = vmul.f32 %v1777_v8, %v3137_v30  ;;  %v3205_v33 = vmul.f32 0.70710677, %v3188_v13 }
 0x14f   : > { %v2383_v6 = vpop.eup %2382  ;;  %v1767_v14 = vmul.f32 %v1766_v10, %v3137_v30  ;;  %v856_v22 = vmul.f32 %v855_v48, %v3148_v53  ;;  %v1159_v2 = vmul.f32 2.1237322e-06, %v3200_v7  ;;  %v1170_v43 = vmul.f32 3.8918573e-05, %v3200_v7 }
 0x150   : > { %v2000_v34 = vmul.f32 %v1968_v19, %v624_v49  ;;  %v1461_v17 = vmul.f32 %v2383_v6, %v3175_v32  ;;  %v3213_v56 = vmul.f32 0.5, %v3110_v11  ;;  %v846_v35 = vadd.f32 0.18741608, %v845_v40 }
 0x151   : > { %v1471_v55 = vand.u32 2147483648, %v3175_v32  ;;  %v3216_v58 = vadd.f32 1.0, %v1778_v37  ;;  %v857_v44 = vadd.f32 0.4994258, %v856_v22  ;;  %v1160_v31 = vadd.f32 0.00028619796, %v1159_v2 }
 0x152   : > { %2032 = vst [vmem:[%s2733_s11 + $0x58] sm:$0xff] %v2000_v34  ;;  %v1449_v30 = vmul.f32 %v1448_v27, %v3062_v4  ;;  %v1462_v1 = vsub.f32 1.0, %v1461_v17  ;;  %v1171_v61 = vadd.f32 0.001143296, %v1170_v43  ;;  %v1477_v38 = vmul.f32 %v3205_v33, %v3205_v33 }
 0x153   : > { %vm1465_vm10 = vweird.f32 %v3175_v32  ;;  %vm3223_vm11 = vcmp.eq.f32.partialorder %v1469_v45, 8.507059e+37  ;;  %v1768_v0 = vadd.f32 1.1283791, %v1767_v14  ;;  %2384 = vrcp.f32 %v3216_v58 }
 0x154   : > { %v1463_v36 = vmul.f32 %v2383_v6, %v1462_v1  ;;  %vm1466_vm12 = vweird.f32 %v2383_v6  ;;  %v858_v3 = vmul.f32 %v857_v44, %v3148_v53  ;;  %v1161_v4 = vmul.f32 %v1160_v31, %v3200_v7 }
 0x155   : > { %v1472_v28 = vor.u32 1.1754944e-38, %v1471_v55  ;;  %v847_v9 = vmul.f32 %v846_v35, %v3148_v53  ;;  %v1172_v12 = vmul.f32 %v1171_v61, %v3200_v7  ;;  %v3232_v5 = vmin.f32 %v1477_v38, 16.0  ;;  %vm1467_vm13 = vmor %vm1465_vm10, %vm1466_vm12 }
 0x156   : > { %v1464_v46 = vadd.f32 %v2383_v6, %v1463_v36  ;;  %v1789_v60 = vand.u32 2147483647, %v3216_v58  ;;  %v3235_v20 = vadd.f32 1.0, %v858_v3  ;;  %v1162_v57 = vadd.f32 0.0036580483, %v1161_v4 }
 0x157   : > { %v1769_v21 = vmul.f32 %v1768_v0, %v3102_v50  ;;  %v1791_v63 = vand.u32 2147483648, %v3216_v58  ;;  %v1173_v49 = vadd.f32 0.014752088, %v1172_v12  ;;  %v573_v53 = vmul.f32 %v3068_v39, %v531_v62 }
 0x158   : > { %v1468_v24 = vsel %vm1467_vm13, %v2383_v6, %v1464_v46  ;;  %2386 = vrcp.f32 %v3235_v20  ;;  %v1479_v16 = vmul.f32 2.1237322e-06, %v3232_v5  ;;  %v1490_v25 = vmul.f32 3.8918573e-05, %v3232_v5  ;;  %v473_v46 = vpop.f32.mrf.mxu0 }
 0x159   : > { %v2385_v29 = vpop.eup %2384  ;;  %v1473_v54 = vsel %vm3223_vm11, %v1472_v28, %v1468_v24  ;;  %v848_v32 = vadd.f32 1.1283791, %v847_v9  ;;  %v1163_v23 = vmul.f32 %v1162_v57, %v3200_v7  ;;  %v1174_v50 = vmul.f32 %v1173_v49, %v3200_v7 }
 0x15a   : > { %v1474_v47 = vmul.f32 %v1473_v54, %v1449_v30  ;;  %v1781_v41 = vmul.f32 %v2385_v29, %v3216_v58  ;;  %vm1785_vm14 = vweird.f32 %v3216_v58  ;;  %vm3251_vm15 = vcmp.eq.f32.partialorder %v1789_v60, 8.507059e+37 }
 0x15b   : > { %v1792_v10 = vor.u32 1.1754944e-38, %v1791_v63  ;;  %v1164_v8 = vadd.f32 0.05243302, %v1163_v23  ;;  %v1175_v27 = vadd.f32 0.112945676, %v1174_v50  ;;  %v3256_v40 = vadd.f32 %v3037_v52, %v573_v53  ;;  %v493_v50 = vpop.f32.mrf.mxu1 }
 0x15c   : > { %v2286_v48 = vclamps-f32 %v1474_v47, 1.0  ;;  %v1782_v19 = vsub.f32 1.0, %v1781_v41  ;;  %v1480_v45 = vadd.f32 0.00028619796, %v1479_v16  ;;  %v1491_v37 = vadd.f32 0.001143296, %v1490_v25 }
 0x15d   : > { %vm1786_vm0 = vweird.f32 %v2385_v29  ;;  %v849_v6 = vmul.f32 %v848_v32, %v3124_v42  ;;  %v1176_v14 = vmul.f32 %v1175_v27, %v3200_v7  ;;  %v3261_v22 = vmul.f32 0.70710677, %v3256_v40 }
 0x15e   : > { %v2387_v2 = vpop.eup %2386  ;;  %v1976_v43 = vadd.f32 1.0, %v2286_v48  ;;  %v1783_v34 = vmul.f32 %v2385_v29, %v1782_v19  ;;  %v1481_v17 = vmul.f32 %v1480_v45, %v3232_v5  ;;  %v1492_v35 = vmul.f32 %v1491_v37, %v3232_v5  ;;  %vm1787_vm1 = vmor %vm1785_vm14, %vm1786_vm0 }
 0x15f   : > { %v861_v55 = vmul.f32 %v2387_v2, %v3235_v20  ;;  %v869_v44 = vand.u32 2147483647, %v3235_v20  ;;  %v1165_v31 = vmul.f32 %v1164_v8, %v3200_v7  ;;  %v1177_v42 = vadd.f32 0.4994258, %v1176_v14 }
 0x160   : > { %v2008_v30 = vmul.f32 %v1976_v43, %v3191_v15  ;;  %v1784_v1 = vadd.f32 %v2385_v29, %v1783_v34  ;;  %v1482_v61 = vadd.f32 0.0036580483, %v1481_v17  ;;  %v1493_v38 = vadd.f32 0.014752088, %v1492_v35 }
 0x161   : > { %v862_v11 = vsub.f32 1.0, %v861_v55  ;;  %v871_v0 = vand.u32 2147483648, %v3235_v20  ;;  %v1178_v36 = vmul.f32 %v1177_v42, %v3200_v7  ;;  %v1797_v3 = vmul.f32 %v3261_v22, %v3261_v22 }
 0x162   : > { %2040 = vst [vmem:[%s2733_s11 + $0x98] sm:$0xff] %v2008_v30  ;;  %v1788_v4 = vsel %vm1787_vm1, %v2385_v29, %v1784_v1  ;;  %vm866_vm2 = vweird.f32 %v2387_v2  ;;  %v1483_v15 = vmul.f32 %v1482_v61, %v3232_v5  ;;  %v1494_v62 = vmul.f32 %v1493_v38, %v3232_v5 }
 0x163   : > { %v1793_v28 = vsel %vm3251_vm15, %v1792_v10, %v1788_v4  ;;  %v863_v58 = vmul.f32 %v2387_v2, %v862_v11  ;;  %v1166_v9 = vadd.f32 0.18741608, %v1165_v31  ;;  %v3281_v12 = vadd.f32 1.0, %v1178_v36 }
 0x164   : > { %v1794_v60 = vmul.f32 %v1793_v28, %v1769_v21  ;;  %v1484_v57 = vadd.f32 0.05243302, %v1483_v15  ;;  %v1495_v63 = vadd.f32 0.112945676, %v1494_v62  ;;  %v3283_v49 = vmin.f32 %v1797_v3, 16.0 }
 0x165   : > { %v864_v53 = vadd.f32 %v2387_v2, %v863_v58  ;;  %vm865_vm3 = vweird.f32 %v3235_v20  ;;  %vm870_vm4 = vcmp.eq.f32.partialorder %v869_v44, 8.507059e+37  ;;  %2388 = vrcp.f32 %v3281_v12 }
 0x166   : > { %v2294_v24 = vclamps-f32 %v1794_v60, 1.0  ;;  %vm867_vm5 = vmor %vm865_vm3, %vm866_vm2  ;;  %v872_v16 = vor.u32 1.1754944e-38, %v871_v0  ;;  %v1485_v25 = vmul.f32 %v1484_v57, %v3232_v5  ;;  %v550_v29 = vmul.f32 %v3068_v39, %v473_v46 }
 0x167   : > { %v868_v54 = vsel %vm867_vm5, %v2387_v2, %v864_v53  ;;  %v1496_v21 = vmul.f32 %v1495_v63, %v3232_v5  ;;  %v1799_v32 = vmul.f32 2.1237322e-06, %v3283_v49  ;;  %v1810_v23 = vmul.f32 3.8918573e-05, %v3283_v49 }
 0x168   : > { %v1984_v20 = vadd.f32 1.0, %v2294_v24  ;;  %v873_v47 = vsel %vm870_vm4, %v872_v16, %v868_v54  ;;  %v3294_v41 = vmul.f32 0.5, %v3158_v51  ;;  %v1167_v26 = vmul.f32 %v1166_v9, %v3200_v7  ;;  %v513_v54 = vpop.f32.mrf.mxu2 }
 0x169   : > { %v874_v10 = vmul.f32 %v873_v47, %v849_v6  ;;  %v1486_v8 = vadd.f32 0.18741608, %v1485_v25  ;;  %v1497_v27 = vadd.f32 0.4994258, %v1496_v21  ;;  %v1800_v48 = vadd.f32 0.00028619796, %v1799_v32 }
 0x16a   : > { %v2016_v19 = vmul.f32 %v1984_v20, %v3197_v59  ;;  %v1811_v45 = vadd.f32 0.001143296, %v1810_v23  ;;  %v586_v37 = vadd.f32 %v3037_v52, %v550_v29  ;;  %v558_v14 = vmul.f32 %v3068_v39, %v493_v50 }
 0x16b   : > { %v2389_v2 = vpop.eup %2388  ;;  %v2271_v43 = vclamps-f32 %v874_v10, 1.0  ;;  %v3301_v34 = vmul.f32 0.5, %v3188_v13  ;;  %v1498_v51 = vmul.f32 %v1497_v27, %v3232_v5  ;;  %v1801_v7 = vmul.f32 %v1800_v48, %v3283_v49  ;;  %v533_v48 = vpop.f32.mrf.mxu3 }
 0x16c   : > { %2048 = vst [vmem:[%s2733_s11 + $0xd8] sm:$0xff] %v2016_v19  ;;  %v1168_v6 = vadd.f32 1.1283791, %v1167_v26  ;;  %v1181_v17 = vmul.f32 %v2389_v2, %v3281_v12  ;;  %v1487_v59 = vmul.f32 %v1486_v8, %v3232_v5  ;;  %v1812_v35 = vmul.f32 %v1811_v45, %v3283_v49 }
 0x16d   : > { %v1961_v55 = vadd.f32 1.0, %v2271_v43  ;;  %v1189_v44 = vand.u32 2147483647, %v3281_v12  ;;  %v3310_v31 = vadd.f32 1.0, %v1498_v51  ;;  %v1802_v13 = vadd.f32 0.0036580483, %v1801_v7 }
 0x16e   : > { %v1182_v42 = vsub.f32 1.0, %v1181_v17  ;;  %v1813_v30 = vadd.f32 0.014752088, %v1812_v35  ;;  %v3312_v1 = vmul.f32 0.70710677, %v586_v37  ;;  %v3315_v61 = vadd.f32 %v3037_v52, %v558_v14 }
 0x16f   : > { %v1993_v38 = vmul.f32 %v1961_v55, %v3213_v56  ;;  %v1191_v5 = vand.u32 2147483648, %v3281_v12  ;;  %2390 = vrcp.f32 %v3310_v31  ;;  %v3321_v11 = vmul.f32 0.5, %v3256_v40 }
 0x170   : > { %v1183_v0 = vmul.f32 %v2389_v2, %v1182_v42  ;;  %vm1186_vm6 = vweird.f32 %v2389_v2  ;;  %v1488_v36 = vadd.f32 1.1283791, %v1487_v59  ;;  %v1803_v3 = vmul.f32 %v1802_v13, %v3283_v49 }
 0x171   : > { %2025 = vst [vmem:[%s2733_s11 + $0x20] sm:$0xff] %v1993_v38  ;;  %v1169_v4 = vmul.f32 %v1168_v6, %v3179_v18  ;;  %v1814_v15 = vmul.f32 %v1813_v30, %v3283_v49  ;;  %v877_v56 = vmul.f32 %v3312_v1, %v3312_v1  ;;  %v3330_v62 = vmul.f32 0.70710677, %v3315_v61 }
 0x172   : > { %v1184_v28 = vadd.f32 %v2389_v2, %v1183_v0  ;;  %vm1185_vm7 = vweird.f32 %v3281_v12  ;;  %vm1190_vm8 = vcmp.eq.f32.partialorder %v1189_v44, 8.507059e+37  ;;  %v1804_v40 = vadd.f32 0.05243302, %v1803_v3 }
 0x173   : > { %vm1187_vm9 = vmor %vm1185_vm7, %vm1186_vm6  ;;  %v1192_v58 = vor.u32 1.1754944e-38, %v1191_v5  ;;  %v1815_v9 = vadd.f32 0.112945676, %v1814_v15  ;;  %v3333_v46 = vmul.f32 0.5, %v586_v37  ;;  %v3335_v60 = vmin.f32 %v877_v56, 16.0 }
 0x174   : > { %v1188_v18 = vsel %vm1187_vm9, %v2389_v2, %v1184_v28  ;;  %v1489_v57 = vmul.f32 %v1488_v36, %v3205_v33  ;;  %v1805_v63 = vmul.f32 %v1804_v40, %v3283_v49  ;;  %v1197_v53 = vmul.f32 %v3330_v62, %v3330_v62  ;;  %v476_v36 = vpop.f32.mrf.mxu0 }
 0x175   : > { %v2391_v24 = vpop.eup %2390  ;;  %v1193_v16 = vsel %vm1190_vm8, %v1192_v58, %v1188_v18  ;;  %v1816_v12 = vmul.f32 %v1815_v9, %v3283_v49  ;;  %v879_v25 = vmul.f32 2.1237322e-06, %v3335_v60  ;;  %v890_v29 = vmul.f32 3.8918573e-05, %v3335_v60 }
 0x176   : > { %v1194_v21 = vmul.f32 %v1193_v16, %v1169_v4  ;;  %v1501_v32 = vmul.f32 %v2391_v24, %v3310_v31  ;;  %v1509_v23 = vand.u32 2147483647, %v3310_v31  ;;  %v1511_v33 = vand.u32 2147483648, %v3310_v31 }
 0x177   : > { %vm1505_vm10 = vweird.f32 %v3310_v31  ;;  %v1817_v50 = vadd.f32 0.4994258, %v1816_v12  ;;  %v880_v20 = vadd.f32 0.00028619796, %v879_v25  ;;  %v891_v47 = vadd.f32 0.001143296, %v890_v29 }
 0x178   : > { %v2279_v26 = vclamps-f32 %v1194_v21, 1.0  ;;  %v1502_v10 = vsub.f32 1.0, %v1501_v32  ;;  %v3348_v8 = vmin.f32 %v1197_v53, 16.0  ;;  %v566_v27 = vmul.f32 %v3068_v39, %v513_v54 }
 0x179   : > { %v1806_v19 = vadd.f32 0.18741608, %v1805_v63  ;;  %v1818_v45 = vmul.f32 %v1817_v50, %v3283_v49  ;;  %v881_v37 = vmul.f32 %v880_v20, %v3335_v60  ;;  %v892_v14 = vmul.f32 %v891_v47, %v3335_v60 }
 0x17a   : > { %v1969_v2 = vadd.f32 1.0, %v2279_v26  ;;  %v1503_v43 = vmul.f32 %v2391_v24, %v1502_v10  ;;  %vm1506_vm11 = vweird.f32 %v2391_v24  ;;  %v1199_v51 = vmul.f32 2.1237322e-06, %v3348_v8 }
 0x17b   : > { %v3355_v7 = vadd.f32 1.0, %v1818_v45  ;;  %v882_v6 = vadd.f32 0.0036580483, %v881_v37  ;;  %v893_v17 = vadd.f32 0.014752088, %v892_v14  ;;  %v574_v59 = vmul.f32 %v3068_v39, %v533_v48  ;;  %vm1507_vm13 = vmor %vm1505_vm10, %vm1506_vm11 }
 0x17c   : > { %v2001_v35 = vmul.f32 %v1969_v2, %v3294_v41  ;;  %v1504_v55 = vadd.f32 %v2391_v24, %v1503_v43  ;;  %vm1510_vm12 = vcmp.eq.f32.partialorder %v1509_v23, 8.507059e+37  ;;  %v1200_v44 = vadd.f32 0.00028619796, %v1199_v51 }
 0x17d   : > { %v1512_v13 = vor.u32 1.1754944e-38, %v1511_v33  ;;  %v1807_v42 = vmul.f32 %v1806_v19, %v3283_v49  ;;  %2392 = vrcp.f32 %v3355_v7  ;;  %v602_v30 = vadd.f32 %v3037_v52, %v566_v27 }
 0x17e   : > { %2033 = vst [vmem:[%s2733_s11 + $0x60] sm:$0xff] %v2001_v35  ;;  %v1508_v38 = vsel %vm1507_vm13, %v2391_v24, %v1504_v55  ;;  %v883_v5 = vmul.f32 %v882_v6, %v3335_v60  ;;  %v894_v0 = vmul.f32 %v893_v17, %v3335_v60  ;;  %v1201_v41 = vmul.f32 %v1200_v44, %v3348_v8 }
 0x17f   : > { %v1513_v3 = vsel %vm1510_vm12, %v1512_v13, %v1508_v38  ;;  %v3369_v31 = vmul.f32 0.5, %v3315_v61  ;;  %v1210_v4 = vmul.f32 3.8918573e-05, %v3348_v8  ;;  %v3373_v49 = vadd.f32 %v3037_v52, %v574_v59 }
 0x180   : > { %v1514_v15 = vmul.f32 %v1513_v3, %v1489_v57  ;;  %v884_v56 = vadd.f32 0.05243302, %v883_v5  ;;  %v895_v28 = vadd.f32 0.112945676, %v894_v0  ;;  %v1202_v40 = vadd.f32 0.0036580483, %v1201_v41 }
 0x181   : > { %v1808_v58 = vadd.f32 1.1283791, %v1807_v42  ;;  %v1211_v9 = vadd.f32 0.001143296, %v1210_v4  ;;  %v3375_v18 = vmul.f32 0.70710677, %v602_v30  ;;  %v551_v63 = vmul.f32 %v3068_v39, %v476_v36 }
 0x182   : > { %v2287_v53 = vclamps-f32 %v1514_v15, 1.0  ;;  %v885_v24 = vmul.f32 %v884_v56, %v3335_v60  ;;  %v896_v61 = vmul.f32 %v895_v28, %v3335_v60  ;;  %v1203_v16 = vmul.f32 %v1202_v40, %v3348_v8  ;;  %v496_v28 = vpop.f32.mrf.mxu1 }
 0x183   : > { %v2393_v12 = vpop.eup %2392  ;;  %v1212_v25 = vmul.f32 %v1211_v9, %v3348_v8  ;;  %v3382_v57 = vmul.f32 0.5, %v602_v30  ;;  %v1517_v29 = vmul.f32 %v3375_v18, %v3375_v18  ;;  %v3387_v54 = vmul.f32 0.70710677, %v3373_v49 }
 0x184   : > { %v1977_v21 = vadd.f32 1.0, %v2287_v53  ;;  %v1821_v32 = vmul.f32 %v2393_v12, %v3355_v7  ;;  %v1829_v23 = vand.u32 2147483647, %v3355_v7  ;;  %v886_v33 = vadd.f32 0.18741608, %v885_v24 }
 0x185   : > { %v1809_v50 = vmul.f32 %v1808_v58, %v3261_v22  ;;  %v897_v20 = vadd.f32 0.4994258, %v896_v61  ;;  %v1204_v47 = vadd.f32 0.05243302, %v1203_v16  ;;  %v1213_v26 = vadd.f32 0.014752088, %v1212_v25 }
 0x186   : > { %v2009_v10 = vmul.f32 %v1977_v21, %v3301_v34  ;;  %v1822_v27 = vsub.f32 1.0, %v1821_v32  ;;  %v1831_v48 = vand.u32 2147483648, %v3355_v7  ;;  %v3394_v19 = vmin.f32 %v1517_v29, 16.0 }
 0x187   : > { %v898_v45 = vmul.f32 %v897_v20, %v3335_v60  ;;  %v1205_v37 = vmul.f32 %v1204_v47, %v3348_v8  ;;  %v1214_v14 = vmul.f32 %v1213_v26, %v3348_v8  ;;  %v1837_v2 = vmul.f32 %v3387_v54, %v3387_v54 }
 0x188   : > { %2041 = vst [vmem:[%s2733_s11 + $0xa0] sm:$0xff] %v2009_v10  ;;  %v1823_v22 = vmul.f32 %v2393_v12, %v1822_v27  ;;  %vm1825_vm14 = vweird.f32 %v3355_v7  ;;  %vm1826_vm15 = vweird.f32 %v2393_v12  ;;  %v1519_v34 = vmul.f32 2.1237322e-06, %v3394_v19 }
 0x189   : > { %v887_v43 = vmul.f32 %v886_v33, %v3335_v60  ;;  %v3405_v51 = vadd.f32 1.0, %v898_v45  ;;  %v1206_v6 = vadd.f32 0.18741608, %v1205_v37  ;;  %v1215_v17 = vadd.f32 0.112945676, %v1214_v14  ;;  %vm1827_vm1 = vmor %vm1825_vm14, %vm1826_vm15 }
 0x18a   : > { %v1824_v59 = vadd.f32 %v2393_v12, %v1823_v22  ;;  %vm1830_vm0 = vcmp.eq.f32.partialorder %v1829_v23, 8.507059e+37  ;;  %v1520_v35 = vadd.f32 0.00028619796, %v1519_v34  ;;  %v1530_v55 = vmul.f32 3.8918573e-05, %v3394_v19 }
 0x18b   : > { %v1832_v44 = vor.u32 1.1754944e-38, %v1831_v48  ;;  %2394 = vrcp.f32 %v3405_v51  ;;  %v3409_v13 = vmin.f32 %v1837_v2, 16.0  ;;  %v3412_v7 = vadd.f32 %v3037_v52, %v551_v63 }
 0x18c   : > { %v1828_v42 = vsel %vm1827_vm1, %v2393_v12, %v1824_v59  ;;  %v1207_v60 = vmul.f32 %v1206_v6, %v3348_v8  ;;  %v1216_v30 = vmul.f32 %v1215_v17, %v3348_v8  ;;  %v1521_v38 = vmul.f32 %v1520_v35, %v3394_v19 }
 0x18d   : > { %v1833_v5 = vsel %vm1830_vm0, %v1832_v44, %v1828_v42  ;;  %v888_v0 = vadd.f32 1.1283791, %v887_v43  ;;  %v909_v41 = vand.u32 2147483647, %v3405_v51  ;;  %v1531_v36 = vadd.f32 0.001143296, %v1530_v55 }
 0x18e   : > { %v1834_v3 = vmul.f32 %v1833_v5, %v1809_v50  ;;  %v911_v4 = vand.u32 2147483648, %v3405_v51  ;;  %v1217_v15 = vadd.f32 0.4994258, %v1216_v30  ;;  %v1522_v56 = vadd.f32 0.0036580483, %v1521_v38 }
 0x18f   : > { %v1532_v52 = vmul.f32 %v1531_v36, %v3394_v19  ;;  %v1839_v40 = vmul.f32 2.1237322e-06, %v3409_v13  ;;  %v1850_v58 = vmul.f32 3.8918573e-05, %v3409_v13  ;;  %v3423_v9 = vmul.f32 0.70710677, %v3412_v7 }
 0x190   : > { %v2295_v63 = vclamps-f32 %v1834_v3, 1.0  ;;  %v1208_v53 = vadd.f32 1.1283791, %v1207_v60  ;;  %v1218_v24 = vmul.f32 %v1217_v15, %v3348_v8  ;;  %v1523_v61 = vmul.f32 %v1522_v56, %v3394_v19 }
 0x191   : > { %v2395_v16 = vpop.eup %2394  ;;  %v1533_v12 = vadd.f32 0.014752088, %v1532_v52  ;;  %v1840_v25 = vadd.f32 0.00028619796, %v1839_v40  ;;  %v1851_v29 = vadd.f32 0.001143296, %v1850_v58  ;;  %v3428_v21 = vmul.f32 %v3068_v39, %v496_v28 }
 0x192   : > { %v1985_v32 = vadd.f32 1.0, %v2295_v63  ;;  %v901_v23 = vmul.f32 %v2395_v16, %v3405_v51  ;;  %v3431_v33 = vadd.f32 1.0, %v1218_v24  ;;  %v917_v50 = vmul.f32 %v3423_v9, %v3423_v9 }
 0x193   : > { %v1524_v20 = vadd.f32 0.05243302, %v1523_v61  ;;  %v1534_v8 = vmul.f32 %v1533_v12, %v3394_v19  ;;  %v1841_v47 = vmul.f32 %v1840_v25, %v3409_v13  ;;  %v1852_v26 = vmul.f32 %v1851_v29, %v3409_v13 }
 0x194   : > { %v2017_v10 = vmul.f32 %v1985_v32, %v3321_v11  ;;  %v889_v39 = vmul.f32 %v888_v0, %v3312_v1  ;;  %v902_v27 = vsub.f32 1.0, %v901_v23  ;;  %2396 = vrcp.f32 %v3431_v33 }
 0x195   : > { %vm905_vm2 = vweird.f32 %v3405_v51  ;;  %vm906_vm3 = vweird.f32 %v2395_v16  ;;  %v1525_v48 = vmul.f32 %v1524_v20, %v3394_v19  ;;  %v1535_v45 = vadd.f32 0.112945676, %v1534_v8 }
 0x196   : > { %2049 = vst [vmem:[%s2733_s11 + $0xe0] sm:$0xff] %v2017_v10  ;;  %v903_v37 = vmul.f32 %v2395_v16, %v902_v27  ;;  %v1842_v14 = vadd.f32 0.0036580483, %v1841_v47  ;;  %v1853_v2 = vadd.f32 0.014752088, %v1852_v26  ;;  %v3444_v22 = vmin.f32 %v917_v50, 16.0  ;;  %vm907_vm5 = vmor %vm905_vm2, %vm906_vm3 }
 0x197   : > { %vm3446_vm4 = vcmp.eq.f32.partialorder %v909_v41, 8.507059e+37  ;;  %v912_v1 = vor.u32 1.1754944e-38, %v911_v4  ;;  %v1209_v11 = vmul.f32 %v1208_v53, %v3330_v62  ;;  %v1536_v43 = vmul.f32 %v1535_v45, %v3394_v19 }
 0x198   : > { %v904_v6 = vadd.f32 %v2395_v16, %v903_v37  ;;  %v1843_v17 = vmul.f32 %v1842_v14, %v3409_v13  ;;  %v1854_v59 = vmul.f32 %v1853_v2, %v3409_v13  ;;  %v919_v35 = vmul.f32 2.1237322e-06, %v3444_v22  ;;  %v516_v14 = vpop.f32.mrf.mxu2 }
 0x199   : > { %vm1225_vm6 = vweird.f32 %v3431_v33  ;;  %v1526_v55 = vadd.f32 0.18741608, %v1525_v48  ;;  %v1537_v44 = vadd.f32 0.4994258, %v1536_v43  ;;  %v930_v42 = vmul.f32 3.8918573e-05, %v3444_v22 }
 0x19a   : > { %v2397_v62 = vpop.eup %2396  ;;  %v908_v60 = vsel %vm907_vm5, %v2395_v16, %v904_v6  ;;  %v1844_v30 = vadd.f32 0.05243302, %v1843_v17  ;;  %v1855_v38 = vadd.f32 0.112945676, %v1854_v59  ;;  %v920_v5 = vadd.f32 0.00028619796, %v919_v35 }
 0x19b   : > { %v913_v0 = vsel %vm3446_vm4, %v912_v1, %v908_v60  ;;  %v1221_v41 = vmul.f32 %v2397_v62, %v3431_v33  ;;  %v1229_v36 = vand.u32 2147483647, %v3431_v33  ;;  %v1231_v51 = vand.u32 2147483648, %v3431_v33 }
 0x19c   : > { %v914_v3 = vmul.f32 %v913_v0, %v889_v39  ;;  %v1538_v4 = vmul.f32 %v1537_v44, %v3394_v19  ;;  %v1845_v15 = vmul.f32 %v1844_v30, %v3409_v13  ;;  %v1856_v56 = vmul.f32 %v1855_v38, %v3409_v13 }
 0x19d   : > { %v1222_v28 = vsub.f32 1.0, %v1221_v41  ;;  %v1527_v52 = vmul.f32 %v1526_v55, %v3394_v19  ;;  %v921_v40 = vmul.f32 %v920_v5, %v3444_v22  ;;  %v931_v58 = vadd.f32 0.001143296, %v930_v42  ;;  %v3481_v19 = vld [vmem:[%s3764_s3] ss:$0 sm:$0xff] }
 0x19e   : > { %v2272_v63 = vclamps-f32 %v914_v3, 1.0  ;;  %v3470_v53 = vadd.f32 1.0, %v1538_v4  ;;  %v1846_v24 = vadd.f32 0.18741608, %v1845_v15  ;;  %v1857_v61 = vadd.f32 0.4994258, %v1856_v56  ;;  %v536_v4 = vpop.f32.mrf.mxu3 }
 0x19f   : > { %v1223_v16 = vmul.f32 %v2397_v62, %v1222_v28  ;;  %vm1226_vm7 = vweird.f32 %v2397_v62  ;;  %v922_v12 = vadd.f32 0.0036580483, %v921_v40  ;;  %v932_v25 = vmul.f32 %v931_v58, %v3444_v22  ;;  %v3513_v55 = vld [vmem:[%s3763_s2] ss:$0 sm:$0xff] }
 0x1a0   : > { %v1962_v29 = vadd.f32 1.0, %v2272_v63  ;;  %vm3473_vm8 = vcmp.eq.f32.partialorder %v1229_v36, 8.507059e+37  ;;  %2398 = vrcp.f32 %v3470_v53  ;;  %v3485_v23 = vadd.f32 %v3481_v19, %v3428_v21  ;;  %vm1227_vm9 = vmor %vm1225_vm6, %vm1226_vm7 }
 0x1a1   : > { %v1224_v50 = vadd.f32 %v2397_v62, %v1223_v16  ;;  %v1232_v20 = vor.u32 1.1754944e-38, %v1231_v51  ;;  %v1847_v8 = vmul.f32 %v1846_v24, %v3409_v13  ;;  %v1858_v47 = vmul.f32 %v1857_v61, %v3409_v13 }
 0x1a2   : > { %v1994_v26 = vmul.f32 %v1962_v29, %v3333_v46  ;;  %v1528_v10 = vadd.f32 1.1283791, %v1527_v52  ;;  %v923_v39 = vmul.f32 %v922_v12, %v3444_v22  ;;  %v933_v27 = vadd.f32 0.014752088, %v932_v25 }
 0x1a3   : > { %v1228_v48 = vsel %vm1227_vm9, %v2397_v62, %v1224_v50  ;;  %v1549_v45 = vand.u32 2147483647, %v3470_v53  ;;  %v1551_v21 = vand.u32 2147483648, %v3470_v53  ;;  %v3495_v37 = vadd.f32 1.0, %v1858_v47 }
 0x1a4   : > { %2026 = vst [vmem:[%s2733_s11 + $0x28] sm:$0xff] %v1994_v26  ;;  %v1233_v13 = vsel %vm3473_vm8, %v1232_v20, %v1228_v48  ;;  %v924_v46 = vadd.f32 0.05243302, %v923_v39  ;;  %v934_v33 = vmul.f32 %v933_v27, %v3444_v22  ;;  %v3502_v2 = vmul.f32 0.70710677, %v3485_v23 }
 0x1a5   : > { %v1234_v34 = vmul.f32 %v1233_v13, %v1209_v11  ;;  %v3505_v1 = vmul.f32 0.5, %v3373_v49  ;;  %v1848_v43 = vadd.f32 1.1283791, %v1847_v8  ;;  %2400 = vrcp.f32 %v3495_v37 }
 0x1a6   : > { %v2399_v6 = vpop.eup %2398  ;;  %v1529_v17 = vmul.f32 %v1528_v10, %v3375_v18  ;;  %v925_v59 = vmul.f32 %v924_v46, %v3444_v22  ;;  %v935_v35 = vadd.f32 0.112945676, %v934_v33  ;;  %v567_v44 = vmul.f32 %v3513_v55, %v516_v14 }
 0x1a7   : > { %v2280_v11 = vclamps-f32 %v1234_v34, 1.0  ;;  %v1541_v49 = vmul.f32 %v2399_v6, %v3470_v53  ;;  %vm1545_vm10 = vweird.f32 %v3470_v53  ;;  %v1237_v42 = vmul.f32 %v3502_v2, %v3502_v2  ;;  %v478_v53 = vpop.f32.mrf.mxu0 }
 0x1a8   : > { %vm3520_vm11 = vcmp.eq.f32.partialorder %v1549_v45, 8.507059e+37  ;;  %v1552_v62 = vor.u32 1.1754944e-38, %v1551_v21  ;;  %v926_v60 = vadd.f32 0.18741608, %v925_v59  ;;  %v936_v30 = vmul.f32 %v935_v35, %v3444_v22 }
 0x1a9   : > { %v1970_v38 = vadd.f32 1.0, %v2280_v11  ;;  %v1542_v5 = vsub.f32 1.0, %v1541_v49  ;;  %v1849_v0 = vmul.f32 %v1848_v43, %v3387_v54  ;;  %v3526_v41 = vmin.f32 %v1237_v42, 16.0 }
 0x1aa   : > { %vm1546_vm12 = vweird.f32 %v2399_v6  ;;  %v927_v36 = vmul.f32 %v926_v60, %v3444_v22  ;;  %v937_v51 = vadd.f32 0.4994258, %v936_v30  ;;  %v3530_v3 = vadd.f32 %v3481_v19, %v567_v44 }
 0x1ab   : > { %v2401_v15 = vpop.eup %2400  ;;  %v2002_v56 = vmul.f32 %v1970_v38, %v3369_v31  ;;  %v1543_v28 = vmul.f32 %v2399_v6, %v1542_v5  ;;  %v1239_v52 = vmul.f32 2.1237322e-06, %v3526_v41  ;;  %v1250_v40 = vmul.f32 3.8918573e-05, %v3526_v41  ;;  %vm1547_vm14 = vmor %vm1545_vm10, %vm1546_vm12 }
 0x1ac   : > { %v1861_v54 = vmul.f32 %v2401_v15, %v3495_v37  ;;  %vm1865_vm13 = vweird.f32 %v3495_v37  ;;  %v1869_v58 = vand.u32 2147483647, %v3495_v37  ;;  %v938_v63 = vmul.f32 %v937_v51, %v3444_v22 }
 0x1ad   : > { %2034 = vst [vmem:[%s2733_s11 + $0x68] sm:$0xff] %v2002_v56  ;;  %v1544_v24 = vadd.f32 %v2399_v6, %v1543_v28  ;;  %v1240_v61 = vadd.f32 0.00028619796, %v1239_v52  ;;  %v1251_v16 = vadd.f32 0.001143296, %v1250_v40  ;;  %v575_v12 = vmul.f32 %v3513_v55, %v536_v4 }
 0x1ae   : > { %v1862_v31 = vsub.f32 1.0, %v1861_v54  ;;  %v1871_v25 = vand.u32 2147483648, %v3495_v37  ;;  %v3545_v29 = vadd.f32 1.0, %v938_v63  ;;  %v3548_v32 = vmul.f32 0.70710677, %v3530_v3 }
 0x1af   : > { %v1548_v50 = vsel %vm1547_vm14, %v2399_v6, %v1544_v24  ;;  %v928_v22 = vadd.f32 1.1283791, %v927_v36  ;;  %v1241_v20 = vmul.f32 %v1240_v61, %v3526_v41  ;;  %v1252_v8 = vmul.f32 %v1251_v16, %v3526_v41 }
 0x1b0   : > { %v1553_v47 = vsel %vm3520_vm11, %v1552_v62, %v1548_v50  ;;  %v1863_v26 = vmul.f32 %v2401_v15, %v1862_v31  ;;  %vm1866_vm15 = vweird.f32 %v2401_v15  ;;  %2402 = vrcp.f32 %v3545_v29 }
 0x1b1   : > { %v1554_v10 = vmul.f32 %v1553_v47, %v1529_v17  ;;  %vm3555_vm0 = vcmp.eq.f32.partialorder %v1869_v58, 8.507059e+37  ;;  %v1242_v27 = vadd.f32 0.0036580483, %v1241_v20  ;;  %v3560_v48 = vadd.f32 %v3481_v19, %v575_v12  ;;  %vm1867_vm1 = vmor %vm1865_vm13, %vm1866_vm15 }
 0x1b2   : > { %v1864_v45 = vadd.f32 %v2401_v15, %v1863_v26  ;;  %v1872_v21 = vor.u32 1.1754944e-38, %v1871_v25  ;;  %v1253_v14 = vadd.f32 0.014752088, %v1252_v8  ;;  %v1557_v13 = vmul.f32 %v3548_v32, %v3548_v32 }
 0x1b3   : > { %v2288_v46 = vclamps-f32 %v1554_v10, 1.0  ;;  %v929_v33 = vmul.f32 %v928_v22, %v3423_v9  ;;  %v1243_v34 = vmul.f32 %v1242_v27, %v3526_v41  ;;  %v552_v43 = vmul.f32 %v3513_v55, %v478_v53 }
 0x1b4   : > { %v1868_v6 = vsel %vm1867_vm1, %v2401_v15, %v1864_v45  ;;  %v951_v17 = vand.u32 2147483648, %v3545_v29  ;;  %v1254_v59 = vmul.f32 %v1253_v14, %v3526_v41  ;;  %v3571_v35 = vmin.f32 %v1557_v13, 16.0 }
 0x1b5   : > { %v1978_v44 = vadd.f32 1.0, %v2288_v46  ;;  %v1873_v11 = vsel %vm3555_vm0, %v1872_v21, %v1868_v6  ;;  %vm945_vm2 = vweird.f32 %v3545_v29  ;;  %v1244_v37 = vadd.f32 0.05243302, %v1243_v34 }
 0x1b6   : > { %v3577_v9 = vmul.f32 0.70710677, %v3560_v48  ;;  %v2403_v49 = vpop.eup %2402  ;;  %v1874_v42 = vmul.f32 %v1873_v11, %v1849_v0  ;;  %v1255_v18 = vadd.f32 0.112945676, %v1254_v59  ;;  %v1559_v62 = vmul.f32 2.1237322e-06, %v3571_v35 }
 0x1b7   : > { %v1570_v60 = vmul.f32 3.8918573e-05, %v3571_v35  ;;  %v2010_v30 = vmul.f32 %v1978_v44, %v3382_v57  ;;  %v941_v38 = vmul.f32 %v2403_v49, %v3545_v29  ;;  %v949_v5 = vand.u32 2147483647, %v3545_v29 }
 0x1b8   : > { %v3585_v36 = vadd.f32 %v3481_v19, %v552_v43  ;;  %v2296_v51 = vclamps-f32 %v1874_v42, 1.0  ;;  %v1256_v4 = vmul.f32 %v1255_v18, %v3526_v41  ;;  %v1560_v15 = vadd.f32 0.00028619796, %v1559_v62 }
 0x1b9   : > { %v1571_v56 = vadd.f32 0.001143296, %v1570_v60  ;;  %2042 = vst [vmem:[%s2733_s11 + $0xa8] sm:$0xff] %v2010_v30  ;;  %v942_v0 = vsub.f32 1.0, %v941_v38  ;;  %v952_v28 = vor.u32 1.1754944e-38, %v951_v17  ;;  %v1245_v52 = vmul.f32 %v1244_v37, %v3526_v41  ;;  %v498_v17 = vpop.f32.mrf.mxu1 }
 0x1ba   : > { %v1877_v57 = vmul.f32 %v3577_v9, %v3577_v9  ;;  %v1986_v40 = vadd.f32 1.0, %v2296_v51  ;;  %v1257_v54 = vadd.f32 0.4994258, %v1256_v4  ;;  %v1561_v58 = vmul.f32 %v1560_v15, %v3571_v35 }
 0x1bb   : > { %v1572_v63 = vmul.f32 %v1571_v56, %v3571_v35  ;;  %v943_v24 = vmul.f32 %v2403_v49, %v942_v0  ;;  %vm946_vm3 = vweird.f32 %v2403_v49  ;;  %v3597_v16 = vmul.f32 0.70710677, %v3585_v36 }
 0x1bc   : > { %v3594_v61 = vmin.f32 %v1877_v57, 16.0  ;;  %v2018_v12 = vmul.f32 %v1986_v40, %v3505_v1  ;;  %v1258_v31 = vmul.f32 %v1257_v54, %v3526_v41  ;;  %v1562_v25 = vadd.f32 0.0036580483, %v1561_v58  ;;  %vm947_vm4 = vmor %vm945_vm2, %vm946_vm3 }
 0x1bd   : > { %v1573_v50 = vadd.f32 0.014752088, %v1572_v63  ;;  %v944_v22 = vadd.f32 %v2403_v49, %v943_v24  ;;  %v1246_v20 = vadd.f32 0.18741608, %v1245_v52  ;;  %v957_v10 = vmul.f32 %v3597_v16, %v3597_v16 }
 0x1be   : > { %v1879_v8 = vmul.f32 2.1237322e-06, %v3594_v61  ;;  %v1890_v47 = vmul.f32 3.8918573e-05, %v3594_v61  ;;  %2050 = vst [vmem:[%s2733_s11 + $0xe8] sm:$0xff] %v2018_v12  ;;  %v3606_v26 = vadd.f32 1.0, %v1258_v31  ;;  %v1563_v53 = vmul.f32 %v1562_v25, %v3571_v35  ;;  %v518_v12 = vpop.f32.mrf.mxu2 }
 0x1bf   : > { %v1574_v1 = vmul.f32 %v1573_v50, %v3571_v35  ;;  %v948_v39 = vsel %vm947_vm4, %v2403_v49, %v944_v22  ;;  %vm950_vm5 = vcmp.eq.f32.partialorder %v949_v5, 8.507059e+37  ;;  %v1247_v29 = vmul.f32 %v1246_v20, %v3526_v41 }
 0x1c0   : > { %v1880_v27 = vadd.f32 0.00028619796, %v1879_v8  ;;  %v1891_v45 = vadd.f32 0.001143296, %v1890_v47  ;;  %v953_v21 = vsel %vm950_vm5, %v952_v28, %v948_v39  ;;  %2404 = vrcp.f32 %v3606_v26 }
 0x1c1   : > { %v954_v14 = vmul.f32 %v953_v21, %v929_v33  ;;  %v1564_v13 = vadd.f32 0.05243302, %v1563_v53  ;;  %v1575_v46 = vadd.f32 0.112945676, %v1574_v1  ;;  %v3616_v6 = vmin.f32 %v957_v10, 16.0 }
 0x1c2   : > { %v1881_v34 = vmul.f32 %v1880_v27, %v3594_v61  ;;  %v1892_v43 = vmul.f32 %v1891_v45, %v3594_v61  ;;  %v619_v59 = vmul.f32 0.5, %v3412_v7  ;;  %v1248_v18 = vadd.f32 1.1283791, %v1247_v29 }
 0x1c3   : > { %v2273_v44 = vclamps-f32 %v954_v14, 1.0  ;;  %v1565_v11 = vmul.f32 %v1564_v13, %v3571_v35  ;;  %v1576_v37 = vmul.f32 %v1575_v46, %v3571_v35  ;;  %v959_v41 = vmul.f32 2.1237322e-06, %v3616_v6 }
 0x1c4   : > { %v1882_v49 = vadd.f32 0.0036580483, %v1881_v34  ;;  %v1893_v33 = vadd.f32 0.014752088, %v1892_v43  ;;  %v560_v60 = vmul.f32 %v3513_v55, %v498_v17  ;;  %v970_v51 = vmul.f32 3.8918573e-05, %v3616_v6 }
 0x1c5   : > { %v1963_v42 = vadd.f32 1.0, %v2273_v44  ;;  %v1577_v62 = vadd.f32 0.4994258, %v1576_v37  ;;  %v960_v5 = vadd.f32 0.00028619796, %v959_v41  ;;  %v1271_v58 = vand.u32 2147483648, %v3606_v26 }
 0x1c6   : > { %v2405_v30 = vpop.eup %2404  ;;  %v1883_v38 = vmul.f32 %v1882_v49, %v3594_v61  ;;  %v1894_v7 = vmul.f32 %v1893_v33, %v3594_v61  ;;  %v1269_v56 = vand.u32 2147483647, %v3606_v26  ;;  %v1566_v0 = vadd.f32 0.18741608, %v1565_v11 }
 0x1c7   : > { %v1995_v4 = vmul.f32 %v1963_v42, %v619_v59  ;;  %v1261_v15 = vmul.f32 %v2405_v30, %v3606_v26  ;;  %v1578_v28 = vmul.f32 %v1577_v62, %v3571_v35  ;;  %v961_v40 = vmul.f32 %v960_v5, %v3616_v6 }
 0x1c8   : > { %v1884_v52 = vadd.f32 0.05243302, %v1883_v38  ;;  %v1895_v57 = vadd.f32 0.112945676, %v1894_v7  ;;  %v971_v63 = vadd.f32 0.001143296, %v970_v51  ;;  %v3633_v24 = vadd.f32 %v3481_v19, %v560_v60 }
 0x1c9   : > { %2027 = vst [vmem:[%s2733_s11 + $0x30] sm:$0xff] %v1995_v4  ;;  %v1262_v54 = vsub.f32 1.0, %v1261_v15  ;;  %v3635_v31 = vadd.f32 1.0, %v1578_v28  ;;  %v962_v22 = vadd.f32 0.0036580483, %v961_v40  ;;  %vm1266_vm6 = vweird.f32 %v2405_v30  ;;  %v538_v28 = vpop.f32.mrf.mxu3 }
 0x1ca   : > { %v1885_v25 = vmul.f32 %v1884_v52, %v3594_v61  ;;  %v1896_v50 = vmul.f32 %v1895_v57, %v3594_v61  ;;  %v1567_v8 = vmul.f32 %v1566_v0, %v3571_v35  ;;  %v972_v47 = vmul.f32 %v971_v63, %v3616_v6 }
 0x1cb   : > { %v1263_v20 = vmul.f32 %v2405_v30, %v1262_v54  ;;  %v1249_v53 = vmul.f32 %v1248_v18, %v3502_v2  ;;  %2406 = vrcp.f32 %v3635_v31  ;;  %v568_v1 = vmul.f32 %v3513_v55, %v518_v12 }
 0x1cc   : > { %vm1265_vm7 = vweird.f32 %v3606_v26  ;;  %v1272_v39 = vor.u32 1.1754944e-38, %v1271_v58  ;;  %v1897_v27 = vadd.f32 0.4994258, %v1896_v50  ;;  %v1886_v45 = vadd.f32 0.18741608, %v1885_v25 }
 0x1cd   : > { %v1264_v10 = vadd.f32 %v2405_v30, %v1263_v20  ;;  %vm1267_vm8 = vmor %vm1265_vm7, %vm1266_vm6  ;;  %v963_v21 = vmul.f32 %v962_v22, %v3616_v6  ;;  %v973_v14 = vadd.f32 0.014752088, %v972_v47  ;;  %v3647_v35 = vmul.f32 0.70710677, %v3633_v24 }
 0x1ce   : > { %vm1270_vm9 = vcmp.eq.f32.partialorder %v1269_v56, 8.507059e+37  ;;  %v1568_v2 = vadd.f32 1.1283791, %v1567_v8  ;;  %v1898_v13 = vmul.f32 %v1897_v27, %v3594_v61  ;;  %v3654_v43 = vadd.f32 %v3481_v19, %v568_v1 }
 0x1cf   : > { %v1268_v29 = vsel %vm1267_vm8, %v2405_v30, %v1264_v10  ;;  %v974_v34 = vmul.f32 %v973_v14, %v3616_v6  ;;  %v1277_v26 = vmul.f32 %v3647_v35, %v3647_v35  ;;  %v1887_v11 = vmul.f32 %v1886_v45, %v3594_v61 }
 0x1d0   : > { %v1273_v46 = vsel %vm1270_vm9, %v1272_v39, %v1268_v29  ;;  %v3656_v59 = vadd.f32 1.0, %v1898_v13  ;;  %v964_v37 = vadd.f32 0.05243302, %v963_v21  ;;  %v627_v41 = vmul.f32 0.5, %v3485_v23 }
 0x1d1   : > { %v1274_v17 = vmul.f32 %v1273_v46, %v1249_v53  ;;  %v2407_v44 = vpop.eup %2406  ;;  %v975_v49 = vadd.f32 0.112945676, %v974_v34  ;;  %v3659_v33 = vmin.f32 %v1277_v26, 16.0  ;;  %v3663_v18 = vmul.f32 0.5, %v3530_v3 }
 0x1d2   : > { %v1581_v62 = vmul.f32 %v2407_v44, %v3635_v31  ;;  %v1569_v60 = vmul.f32 %v1568_v2, %v3548_v32  ;;  %v1589_v30 = vand.u32 2147483647, %v3635_v31  ;;  %2408 = vrcp.f32 %v3656_v59 }
 0x1d3   : > { %v2281_v42 = vclamps-f32 %v1274_v17, 1.0  ;;  %v3670_v61 = vmul.f32 0.70710677, %v3654_v43  ;;  %v1591_v23 = vand.u32 2147483648, %v3635_v31  ;;  %v976_v5 = vmul.f32 %v975_v49, %v3616_v6 }
 0x1d4   : > { %v1582_v7 = vsub.f32 1.0, %v1581_v62  ;;  %v1888_v3 = vadd.f32 1.1283791, %v1887_v11  ;;  %v965_v51 = vmul.f32 %v964_v37, %v3616_v6  ;;  %v1279_v4 = vmul.f32 2.1237322e-06, %v3659_v33 }
 0x1d5   : > { %v1971_v38 = vadd.f32 1.0, %v2281_v42  ;;  %v1290_v32 = vmul.f32 3.8918573e-05, %v3659_v33  ;;  %vm1586_vm10 = vweird.f32 %v2407_v44  ;;  %v977_v0 = vadd.f32 0.4994258, %v976_v5 }
 0x1d6   : > { %v1583_v56 = vmul.f32 %v2407_v44, %v1582_v7  ;;  %vm1585_vm11 = vweird.f32 %v3635_v31  ;;  %v1280_v52 = vadd.f32 0.00028619796, %v1279_v4  ;;  %v1597_v40 = vmul.f32 %v3670_v61, %v3670_v61 }
 0x1d7   : > { %v2003_v15 = vmul.f32 %v1971_v38, %v627_v41  ;;  %v1291_v57 = vadd.f32 0.001143296, %v1290_v32  ;;  %vm1590_vm12 = vcmp.eq.f32.partialorder %v1589_v30, 8.507059e+37  ;;  %v1592_v58 = vor.u32 1.1754944e-38, %v1591_v23  ;;  %vm1587_vm13 = vmor %vm1585_vm11, %vm1586_vm10 }
 0x1d8   : > { %v1584_v54 = vadd.f32 %v2407_v44, %v1583_v56  ;;  %v978_v63 = vmul.f32 %v977_v0, %v3616_v6  ;;  %v2409_v12 = vpop.eup %2408  ;;  %v1281_v25 = vmul.f32 %v1280_v52, %v3659_v33  ;;  %v3684_v22 = vmin.f32 %v1597_v40, 16.0 }
 0x1d9   : > { %2035 = vst [vmem:[%s2733_s11 + $0x70] sm:$0xff] %v2003_v15  ;;  %v1292_v50 = vmul.f32 %v1291_v57, %v3659_v33  ;;  %v576_v31 = vmul.f32 %v3513_v55, %v538_v28  ;;  %v1889_v8 = vmul.f32 %v1888_v3, %v3577_v9  ;;  %v1901_v47 = vmul.f32 %v2409_v12, %v3656_v59 }
 0x1da   : > { %v1588_v20 = vsel %vm1587_vm13, %v2407_v44, %v1584_v54  ;;  %v966_v53 = vadd.f32 0.18741608, %v965_v51  ;;  %v3689_v10 = vadd.f32 1.0, %v978_v63  ;;  %v1282_v39 = vadd.f32 0.0036580483, %v1281_v25 }
 0x1db   : > { %v1593_v1 = vsel %vm1590_vm12, %v1592_v58, %v1588_v20  ;;  %v1293_v27 = vadd.f32 0.014752088, %v1292_v50  ;;  %v1902_v21 = vsub.f32 1.0, %v1901_v47  ;;  %v1599_v14 = vmul.f32 2.1237322e-06, %v3684_v22 }
 0x1dc   : > { %v1594_v45 = vmul.f32 %v1593_v1, %v1569_v60  ;;  %v1610_v29 = vmul.f32 3.8918573e-05, %v3684_v22  ;;  %v1909_v2 = vand.u32 2147483647, %v3656_v59  ;;  %v1911_v55 = vand.u32 2147483648, %v3656_v59 }
 0x1dd   : > { %2410 = vrcp.f32 %v3689_v10  ;;  %v3697_v9 = vadd.f32 %v3481_v19, %v576_v31  ;;  %v1903_v46 = vmul.f32 %v2409_v12, %v1902_v21  ;;  %vm1906_vm14 = vweird.f32 %v2409_v12 }
 0x1de   : > { %v2289_v13 = vclamps-f32 %v1594_v45, 1.0  ;;  %v1294_v34 = vmul.f32 %v1293_v27, %v3659_v33  ;;  %vm1905_vm15 = vweird.f32 %v3656_v59  ;;  %v1283_v26 = vmul.f32 %v1282_v39, %v3659_v33 }
 0x1df   : > { %v1600_v17 = vadd.f32 0.00028619796, %v1599_v14  ;;  %v1611_v44 = vadd.f32 0.001143296, %v1610_v29  ;;  %v1904_v37 = vadd.f32 %v2409_v12, %v1903_v46  ;;  %v967_v49 = vmul.f32 %v966_v53, %v3616_v6  ;;  %vm1907_vm0 = vmor %vm1905_vm15, %vm1906_vm14 }
 0x1e0   : > { %v1979_v11 = vadd.f32 1.0, %v2289_v13  ;;  %v1295_v41 = vadd.f32 0.112945676, %v1294_v34  ;;  %v1912_v19 = vor.u32 1.1754944e-38, %v1911_v55  ;;  %v3706_v60 = vmul.f32 0.70710677, %v3697_v9 }
 0x1e1   : > { %v1601_v42 = vmul.f32 %v1600_v17, %v3684_v22  ;;  %v1612_v62 = vmul.f32 %v1611_v44, %v3684_v22  ;;  %v1908_v30 = vsel %vm1907_vm0, %v2409_v12, %v1904_v37  ;;  %vm1910_vm1 = vcmp.eq.f32.partialorder %v1909_v2, 8.507059e+37 }
 0x1e2   : > { %v2011_v59 = vmul.f32 %v1979_v11, %v3663_v18  ;;  %v1296_v38 = vmul.f32 %v1295_v41, %v3659_v33  ;;  %v1913_v23 = vsel %vm1910_vm1, %v1912_v19, %v1908_v30  ;;  %v1284_v6 = vadd.f32 0.05243302, %v1283_v26 }
 0x1e3   : > { %v2411_v7 = vpop.eup %2410  ;;  %v1613_v5 = vadd.f32 0.014752088, %v1612_v62  ;;  %v1917_v3 = vmul.f32 %v3706_v60, %v3706_v60  ;;  %v643_v51 = vmul.f32 0.5, %v3560_v48  ;;  %v1914_v4 = vmul.f32 %v1913_v23, %v1889_v8 }
 0x1e4   : > { %2043 = vst [vmem:[%s2733_s11 + $0xb0] sm:$0xff] %v2011_v59  ;;  %v968_v32 = vadd.f32 1.1283791, %v967_v49  ;;  %v981_v15 = vmul.f32 %v2411_v7, %v3689_v10  ;;  %v1297_v56 = vadd.f32 0.4994258, %v1296_v38  ;;  %v991_v54 = vand.u32 2147483648, %v3689_v10 }
 0x1e5   : > { %v1602_v18 = vadd.f32 0.0036580483, %v1601_v42  ;;  %v1614_v0 = vmul.f32 %v1613_v5, %v3684_v22  ;;  %v3716_v28 = vmin.f32 %v1917_v3, 16.0  ;;  %v2297_v52 = vclamps-f32 %v1914_v4, 1.0 }
 0x1e6   : > { %v982_v57 = vsub.f32 1.0, %v981_v15  ;;  %v989_v40 = vand.u32 2147483647, %v3689_v10  ;;  %v1285_v58 = vmul.f32 %v1284_v6, %v3659_v33  ;;  %v1298_v48 = vmul.f32 %v1297_v56, %v3659_v33 }
 0x1e7   : > { %v1615_v63 = vadd.f32 0.112945676, %v1614_v0  ;;  %v1919_v12 = vmul.f32 2.1237322e-06, %v3716_v28  ;;  %v1987_v25 = vadd.f32 1.0, %v2297_v52  ;;  %vm986_vm2 = vweird.f32 %v2411_v7 }
 0x1e8   : > { %v983_v50 = vmul.f32 %v2411_v7, %v982_v57  ;;  %v1930_v31 = vmul.f32 3.8918573e-05, %v3716_v28  ;;  %v1299_v20 = vadd.f32 1.0, %v1298_v48  ;;  %v1603_v8 = vmul.f32 %v1602_v18, %v3684_v22 }
 0x1e9   : > { %v1616_v47 = vmul.f32 %v1615_v63, %v3684_v22  ;;  %v1920_v53 = vadd.f32 0.00028619796, %v1919_v12  ;;  %v2019_v1 = vmul.f32 %v1987_v25, %v643_v51  ;;  %vm985_vm3 = vweird.f32 %v3689_v10 }
 0x1ea   : > { %v984_v39 = vadd.f32 %v2411_v7, %v983_v50  ;;  %v1931_v27 = vadd.f32 0.001143296, %v1930_v31  ;;  %v969_v45 = vmul.f32 %v968_v32, %v3597_v16  ;;  %vm987_vm4 = vmor %vm985_vm3, %vm986_vm2  ;;  %v992_v21 = vor.u32 1.1754944e-38, %v991_v54 }
 0x1eb   : > { %2412 = vrcp.f32 %v1299_v20  ;;  %2051 = vst [vmem:[%s2733_s11 + $0xf0] sm:$0xff] %v2019_v1  ;;  %vm990_vm5 = vcmp.eq.f32.partialorder %v989_v40, 8.507059e+37  ;;  %v1286_v29 = vadd.f32 0.18741608, %v1285_v58  ;;  %v1617_v2 = vadd.f32 0.4994258, %v1616_v47 }
 0x1ec   : > { %v988_v14 = vsel %vm987_vm4, %v2411_v7, %v984_v39  ;;  %v1604_v13 = vadd.f32 0.05243302, %v1603_v8  ;;  %v1921_v46 = vmul.f32 %v1920_v53, %v3716_v28  ;;  %v1932_v34 = vmul.f32 %v1931_v27, %v3716_v28 }
 0x1ed   : > { %v993_v55 = vsel %vm990_vm5, %v992_v21, %v988_v14  ;;  %v1618_v10 = vmul.f32 %v1617_v2, %v3684_v22  ;;  %v1287_v37 = vmul.f32 %v1286_v29, %v3659_v33  ;;  %v620_v42 = vmul.f32 0.5, %v3585_v36 }
 0x1ee   : > { %v994_v26 = vmul.f32 %v993_v55, %v969_v45  ;;  %v1933_v17 = vadd.f32 0.014752088, %v1932_v34  ;;  %v1605_v49 = vmul.f32 %v1604_v13, %v3684_v22  ;;  %v1922_v41 = vadd.f32 0.0036580483, %v1921_v46 }
 0x1ef   : > { %v1619_v16 = vadd.f32 1.0, %v1618_v10  ;;  %v1288_v23 = vadd.f32 1.1283791, %v1287_v37  ;;  %v1311_v6 = vand.u32 2147483648, %v1299_v20  ;;  %v1309_v51 = vand.u32 2147483647, %v1299_v20 }
 0x1f0   : > { %v2274_v44 = vclamps-f32 %v994_v26, 1.0  ;;  %v1934_v19 = vmul.f32 %v1933_v17, %v3716_v28  ;;  %v1606_v5 = vadd.f32 0.18741608, %v1605_v49  ;;  %v1923_v3 = vmul.f32 %v1922_v41, %v3716_v28 }
 0x1f1   : > { %v2413_v11 = vpop.eup %2412  ;;  %2414 = vrcp.f32 %v1619_v16  ;;  %vm1305_vm7 = vweird.f32 %v1299_v20  ;;  %v1312_v56 = vor.u32 1.1754944e-38, %v1311_v6  ;;  %v1289_v52 = vmul.f32 %v1288_v23, %v3647_v35 }
 0x1f2   : > { %v1964_v62 = vadd.f32 1.0, %v2274_v44  ;;  %v1301_v59 = vmul.f32 %v2413_v11, %v1299_v20  ;;  %v1935_v7 = vadd.f32 0.112945676, %v1934_v19  ;;  %vm1306_vm6 = vweird.f32 %v2413_v11 }
 0x1f3   : > { %vm1307_vm8 = vmor %vm1305_vm7, %vm1306_vm6  ;;  %v1607_v18 = vmul.f32 %v1606_v5, %v3684_v22  ;;  %v1924_v0 = vadd.f32 0.05243302, %v1923_v3  ;;  %vm1310_vm9 = vcmp.eq.f32.partialorder %v1309_v51, 8.507059e+37  ;;  %v1631_v25 = vand.u32 2147483648, %v1619_v16 }
 0x1f4   : > { %v1996_v30 = vmul.f32 %v1964_v62, %v620_v42  ;;  %v1302_v38 = vsub.f32 1.0, %v1301_v59  ;;  %v1936_v4 = vmul.f32 %v1935_v7, %v3716_v28  ;;  %v1629_v22 = vand.u32 2147483647, %v1619_v16 }
 0x1f5   : > { %v1608_v12 = vadd.f32 1.1283791, %v1607_v18  ;;  %v1925_v50 = vmul.f32 %v1924_v0, %v3716_v28  ;;  %v628_v35 = vmul.f32 0.5, %v3633_v24  ;;  %vm1625_vm11 = vweird.f32 %v1619_v16 }
 0x1f6   : > { %2028 = vst [vmem:[%s2733_s11 + $0x38] sm:$0xff] %v1996_v30  ;;  %v1303_v33 = vmul.f32 %v2413_v11, %v1302_v38  ;;  %v1937_v36 = vadd.f32 0.4994258, %v1936_v4  ;;  %v1632_v1 = vor.u32 1.1754944e-38, %v1631_v25  ;;  %vm1630_vm13 = vcmp.eq.f32.partialorder %v1629_v22, 8.507059e+37 }
 0x1f7   : > { %v2415_v15 = vpop.eup %2414  ;;  %v1926_v39 = vadd.f32 0.18741608, %v1925_v50  ;;  %v1609_v45 = vmul.f32 %v1608_v12, %v3670_v61  ;;  %v636_v46 = vmul.f32 0.5, %v3654_v43  ;;  %v644_v42 = vmul.f32 0.5, %v3697_v9 }
 0x1f8   : > { %v1304_v32 = vadd.f32 %v2413_v11, %v1303_v33  ;;  %v1621_v40 = vmul.f32 %v2415_v15, %v1619_v16  ;;  %v1938_v58 = vmul.f32 %v1937_v36, %v3716_v28  ;;  %vm1626_vm10 = vweird.f32 %v2415_v15 }
 0x1f9   : > { %vm1627_vm12 = vmor %vm1625_vm11, %vm1626_vm10  ;;  %v1927_v55 = vmul.f32 %v1926_v39, %v3716_v28 }
 0x1fa   : > { %v1308_v57 = vsel %vm1307_vm8, %v2413_v11, %v1304_v32  ;;  %v1622_v63 = vsub.f32 1.0, %v1621_v40  ;;  %v1939_v31 = vadd.f32 1.0, %v1938_v58 }
 0x1fb   : > { %v1313_v54 = vsel %vm1310_vm9, %v1312_v56, %v1308_v57  ;;  %v1928_v10 = vadd.f32 1.1283791, %v1927_v55 }
 0x1fc   : > { %v1314_v48 = vmul.f32 %v1313_v54, %v1289_v52  ;;  %v1623_v8 = vmul.f32 %v2415_v15, %v1622_v63  ;;  %2416 = vrcp.f32 %v1939_v31  ;;  %v1951_v17 = vand.u32 2147483648, %v1939_v31 }
 0x1fd   : > { %v1949_v61 = vand.u32 2147483647, %v1939_v31  ;;  %vm1945_vm15 = vweird.f32 %v1939_v31  ;;  %v1929_v28 = vmul.f32 %v1928_v10, %v3706_v60 }
 0x1fe   : > { %v2282_v20 = vclamps-f32 %v1314_v48, 1.0  ;;  %v1624_v53 = vadd.f32 %v2415_v15, %v1623_v8  ;;  %v1952_v37 = vor.u32 1.1754944e-38, %v1951_v17 }
 0x1ff   : > { %vm1950_vm1 = vcmp.eq.f32.partialorder %v1949_v61, 8.507059e+37 }
 0x200   : > { %v1972_v47 = vadd.f32 1.0, %v2282_v20  ;;  %v1628_v21 = vsel %vm1627_vm12, %v2415_v15, %v1624_v53 }
 0x201   : > { %v1633_v14 = vsel %vm1630_vm13, %v1632_v1, %v1628_v21 }
 0x202   : > { %v2004_v27 = vmul.f32 %v1972_v47, %v628_v35  ;;  %v1634_v29 = vmul.f32 %v1633_v14, %v1609_v45  ;;  %v2417_v2 = vpop.eup %2416 }
 0x203   : > { %v1941_v24 = vmul.f32 %v2417_v2, %v1939_v31  ;;  %vm1946_vm14 = vweird.f32 %v2417_v2 }
 0x204   : > { %2036 = vst [vmem:[%s2733_s11 + $0x78] sm:$0xff] %v2004_v27  ;;  %v2290_v13 = vclamps-f32 %v1634_v29, 1.0  ;;  %vm1947_vm0 = vmor %vm1945_vm15, %vm1946_vm14 }
 0x205   : > { %v1942_v26 = vsub.f32 1.0, %v1941_v24 }
 0x206   : > { %v1980_v34 = vadd.f32 1.0, %v2290_v13 }
 0x207   : > { %v1943_v16 = vmul.f32 %v2417_v2, %v1942_v26 }
 0x208   : > { %v2012_v44 = vmul.f32 %v1980_v34, %v636_v46 }
 0x209   : > { %v1944_v11 = vadd.f32 %v2417_v2, %v1943_v16 }
 0x20a   : > { %2044 = vst [vmem:[%s2733_s11 + $0xb8] sm:$0xff] %v2012_v44 }
 0x20b   : > { %v1948_v49 = vsel %vm1947_vm0, %v2417_v2, %v1944_v11 }
 0x20c   : > { %v1953_v41 = vsel %vm1950_vm1, %v1952_v37, %v1948_v49 }
 0x20d   : > { %v1954_v43 = vmul.f32 %v1953_v41, %v1929_v28 }
 0x20f   : > { %v2298_v19 = vclamps-f32 %v1954_v43, 1.0 }
 0x211   : > { %v1988_v62 = vadd.f32 1.0, %v2298_v19 }
 0x213   : > { %v2020_v59 = vmul.f32 %v1988_v62, %v644_v42 }
 0x215   : > { %2052 = vst [vmem:[%s2733_s11 + $0xf8] sm:$0xff] %v2020_v59 }
 0x216 PF: > { %s14_s17 = sadd.s32 1, %s2444_s17   ;;  %s3796_s15 = smov %s2440_s16 }
 0x217   : > { %p11_p5 = scmp.ge.s32.totalorder %s14_s17, 4   ;;  %s3797_s16 = smov %s3799_s18 }
 0x219   :  { %13 = sbr.rel (!%p11_p5) target bundleno = 2 (0x2), region = 75 }

</bundles_post_ra>
